<compile_context>
chip_gen: v5e
topology: v5e:2x2
jax: 0.10.0
libtpu: 0.0.40
codegen_flags: <defaults>
</compile_context>

<pallas_src>
import functools

import jax
import jax.numpy as jnp
from jax import lax
from jax.experimental import pallas as pl
from jax.experimental.pallas import tpu as pltpu

_LANE = 128
_SUBLANE = 8
# Per-norm clamp. torch.nn.CosineSimilarity clamps the norm *product* at 1e-8;
# this only differs for near-zero feature vectors.
_NORM_EPS = 1e-8


def _bcl_layer_kernel(a_row_ref, a_col_ref, w_row_ref, w_col_ref, out_ref,
                      pos_acc_ref, neg_acc_ref, *,
                      inv_temp, n_valid, tile_i, tile_j, padded,
                      exp_dtype, binary_gt):
    """Tiled 'encoder_patchseries' loss for one layer, fused over all patches.

    a_row_ref / a_col_ref : (1, TI, C+1) / (1, TJ, C+1) bf16 pre-normalized
                            feature tiles (row operand pre-scaled by 1/T and
                            carrying the max-shift correction channel)
    w_row_ref / w_col_ref : (1, P, TI) / (1, P, TJ) f32 per-position weights
    out_ref               : (1, 1, 8, 128) f32 — per-(batch,row-tile) scalar
                            partial, replicated over the slab (lane-dense store)
    pos_acc_ref/neg_acc_ref: (P, 1, TI) f32 VMEM accumulators over column tiles
    """
    ri = pl.program_id(1)
    cj = pl.program_id(2)
    last_j = pl.num_programs(2) - 1
    n_patches = w_row_ref.shape[1]

    @pl.when(cj == 0)
    def _init():
        pos_acc_ref[...] = jnp.zeros_like(pos_acc_ref)
        neg_acc_ref[...] = jnp.zeros_like(neg_acc_ref)

    # ---- shifted, scaled cosine-similarity tile ---------------------------
    # Features arrive pre-normalized; the only per-element work is the MXU
    # matmul and one constant subtraction (the data-dependent part of the
    # shift rides in the extra channel of the operands).
    dots = lax.dot_general(
        a_row_ref[...], a_col_ref[...],
        dimension_numbers=(((2,), (2,)), ((0,), (0,))),
        preferred_element_type=jnp.float32)                      # (1, TI, TJ)
    sim = dots - inv_temp                                        # <= 0

    # ---- per-patch partial sums over this column tile ---------------------
    def accumulate(mask):                                        # mask: (1,1,TJ) or None
        if binary_gt:
            # d in {0,1}: exp(sim*(1-d)) == where(d, 1, exp(sim)),
            # sim*d == where(d, sim, 0) -> one exp per tile instead of P.
            e = jnp.exp(sim.astype(exp_dtype)).astype(jnp.float32)
            if mask is not None:
                e = e * mask
                sim_p = sim * mask
            else:
                sim_p = sim
        for p in range(n_patches):
            w_r = w_row_ref[:, p, :]                             # (1, TI)
            w_c = w_col_ref[:, p, :]                             # (1, TJ)
            d = jnp.abs(w_c[:, None, :] - w_r[:, :, None])       # (1, TI, TJ)
            if binary_gt:
                far = d > 0.5
                pos_part = jnp.sum(jnp.where(far, sim_p, 0.0), axis=2)
                one = 1.0 if mask is None else mask
                neg_part = jnp.sum(jnp.where(far, one, e), axis=2)
            else:
                t = sim * d
                ex = jnp.exp((sim - t).astype(exp_dtype)).astype(jnp.float32)
                if mask is not None:
                    pos_part = jnp.sum(t * mask, axis=2)
                    neg_part = jnp.sum(ex * mask, axis=2)
                else:
                    pos_part = jnp.sum(t, axis=2)
                    neg_part = jnp.sum(ex, axis=2)
            pos_acc_ref[p, :, :] = pos_acc_ref[p, :, :] + pos_part
            neg_acc_ref[p, :, :] = neg_acc_ref[p, :, :] + neg_part

    if not padded:
        accumulate(None)
    else:
        @pl.when(cj != last_j)
        def _interior():
            accumulate(None)

        @pl.when(cj == last_j)
        def _edge():
            col_pos = cj * tile_j + lax.broadcasted_iota(
                jnp.int32, (1, 1, tile_j), 2)
            accumulate((col_pos < n_valid).astype(jnp.float32))

    # ---- finalize this (batch, row-tile) ----------------------------------
    @pl.when(cj == last_j)
    def _finalize():
        if padded:
            row_pos = ri * tile_i + lax.broadcasted_iota(
                jnp.int32, (1, tile_i), 1)
            row_valid = row_pos < n_valid                        # (1, TI)
            row_mask = row_valid.astype(jnp.float32)
        total = jnp.float32(0.0)
        for p in range(n_patches):
            # logits_p = -sum_{i,j}[sim*d - log(neg2_i)]
            #          = N * sum_i log(neg2_i) - sum_{i,j} sim*d
            pos_v = pos_acc_ref[p, :, :]
            neg_v = jnp.maximum(neg_acc_ref[p, :, :], 1e-30)
            if padded:
                pos_sum = jnp.sum(pos_v * row_mask)
                neg_sum = jnp.sum(jnp.where(row_valid, jnp.log(neg_v), 0.0))
            else:
                pos_sum = jnp.sum(pos_v)
                neg_sum = jnp.sum(jnp.log(neg_v))
            total = total + (jnp.float32(n_valid) * neg_sum - pos_sum)
        out_ref[...] = jnp.full((1, 1, _SUBLANE, _LANE), total, jnp.float32)


def _pick_tiles(n):
    """Column tile up to 512 lanes (pad N up only when waste is small); row tile
    capped so (TI,TJ) f32 temporaries stay a few hundred KiB (v7x-safe)."""
    n128 = ((n + _LANE - 1) // _LANE) * _LANE
    tile_j, n_pad = _LANE, n128
    for t in (512, 256):
        pad_to = ((n128 + t - 1) // t) * t
        waste = pad_to - n128
        if waste <= _LANE and 4 * waste <= n128:
            tile_j, n_pad = t, pad_to
            break
    tile_i = min(256, tile_j)
    while tile_i > _LANE and tile_i * tile_j > 256 * 512:
        tile_i //= 2
    return tile_i, tile_j, n_pad


def _default_exp_dtype():
    """bf16 exp on v6e/v7x (~2x EUP rate); f32 elsewhere (no bf16 EUP on v5e)."""
    try:
        kind = jax.devices()[0].device_kind.lower()
    except Exception:
        return jnp.float32
    if "v6" in kind or "v7" in kind:
        return jnp.bfloat16
    return jnp.float32


def bcl_layer_loss(a1, weights, temperature, scale, *, binary_gt=False,
                   exp_dtype=None):
    """One feature layer's contrastive loss, fused over all gt patch maps.

    a1      : (B, C, N) float features
    weights : (B, P, N) per-position weights (gt patches, or the weighted gt
              average reshaped to (B, 1, N) for similarityfirst == False)
    scale   : sum of 'encoder_patchseries' criterion weights
              (divided by patchnumber for the similarityfirst == True branch)
    """
    B, C, N = a1.shape
    _, P, _ = weights.shape
    inv_temp = 1.0 / float(temperature)
    if exp_dtype is None:
        exp_dtype = _default_exp_dtype()

    tile_i, tile_j, n_pad = _pick_tiles(N)
    grid_i = n_pad // tile_i
    grid_j = n_pad // tile_j
    padded = n_pad != N

    # Pre-normalize in f32 and fold 1/T into the row operand so the kernel's
    # similarity is one MXU matmul plus a constant subtraction.
    a1f = a1.astype(jnp.float32)
    sq = jnp.sum(a1f * a1f, axis=1)                               # (B, N)
    inv = lax.rsqrt(jnp.maximum(sq, _NORM_EPS * _NORM_EPS))
    # Exact global max of the similarity: it always sits on the diagonal and
    # equals 1 unless *every* vector is eps-clamped. Its deviation from 1 is
    # folded into the matmul via one extra channel (row: -delta, col: 1).
    delta = (jnp.max(sq * inv * inv) - 1.0) * inv_temp            # <= 0, usually 0
    a1n = jnp.transpose(a1f * inv[:, None, :], (0, 2, 1))         # (B, N, C)

    row = jnp.concatenate(
        [a1n * inv_temp, jnp.broadcast_to(-delta, (B, N, 1))], axis=-1)
    col = jnp.concatenate([a1n, jnp.ones((B, N, 1), jnp.float32)], axis=-1)

    pad_n = n_pad - N
    row = jnp.pad(row, ((0, 0), (0, pad_n), (0, 0))).astype(jnp.bfloat16)
    col = jnp.pad(col, ((0, 0), (0, pad_n), (0, 0))).astype(jnp.bfloat16)
    w = jnp.pad(weights.astype(jnp.float32), ((0, 0), (0, 0), (0, pad_n)))
    caug = C + 1

    kernel = functools.partial(
        _bcl_layer_kernel,
        inv_temp=inv_temp, n_valid=N, tile_i=tile_i, tile_j=tile_j,
        padded=padded, exp_dtype=exp_dtype, binary_gt=binary_gt)

    a_bytes = B * n_pad * caug * 2
    w_bytes = B * P * n_pad * 4
    cost = pl.CostEstimate(
        flops=2 * B * n_pad * n_pad * caug + 6 * P * B * n_pad * n_pad,
        transcendentals=(1 if binary_gt else P) * B * n_pad * n_pad,
        bytes_accessed=(grid_i + grid_j) * (a_bytes + w_bytes)
        + B * grid_i * _SUBLANE * _LANE * 4,
    )

    partials = pl.pallas_call(
        kernel,
        out_shape=jax.ShapeDtypeStruct((B, grid_i, _SUBLANE, _LANE),
                                       jnp.float32),
        grid_spec=pltpu.PrefetchScalarGridSpec(
            num_scalar_prefetch=0,
            grid=(B, grid_i, grid_j),
            in_specs=[
                pl.BlockSpec((1, tile_i, caug), lambda b, ri, cj: (b, ri, 0)),
                pl.BlockSpec((1, tile_j, caug), lambda b, ri, cj: (b, cj, 0)),
                pl.BlockSpec((1, P, tile_i), lambda b, ri, cj: (b, 0, ri)),
                pl.BlockSpec((1, P, tile_j), lambda b, ri, cj: (b, 0, cj)),
            ],
            out_specs=pl.BlockSpec((1, 1, _SUBLANE, _LANE),
                                   lambda b, ri, cj: (b, ri, 0, 0)),
            scratch_shapes=[
                pltpu.VMEM((P, 1, tile_i), jnp.float32),  # sum_j sim*d
                pltpu.VMEM((P, 1, tile_i), jnp.float32),  # sum_j exp(sim*(1-d))
            ]),
        compiler_params=pltpu.CompilerParams(
            dimension_semantics=("parallel", "parallel", "arbitrary"),
            vmem_limit_bytes=32 * 1024 * 1024),
        cost_estimate=cost,
    )(row, col, w, w)

    return scale * jnp.sum(partials[:, :, 0, 0])


def cl_loss_forward(f_list, gt_list, cfg):
    """Mirrors CL_Loss.forward: loss = sum_i cal_loss(f[i], gt[i])."""
    assert cfg["distance_measure"] == "cosine"
    # All 'encoder_patchseries' criterions see identical logits (the repeated
    # max-subtraction in the PyTorch loop is a no-op once sim is shifted),
    # so their weights simply add.
    total_cw = sum(w for name, w in cfg["criterions"]
                   if name == "encoder_patchseries")
    total = jnp.float32(0.0)
    if total_cw == 0.0:
        return total
    pfw = cfg["patchforeground_weight"]
    binary_gt = bool(cfg.get("binary_gt", False))   # opt-in: gt patches in {0,1}
    for a1, gt in zip(f_list, gt_list):
        if cfg["similarityfirst"]:
            weights = gt                                    # (B, P, N)
            scale = total_cw / float(cfg["patchnumber"])
            total = total + bcl_layer_loss(a1, weights, cfg["temperature"],
                                           scale, binary_gt=binary_gt)
        else:
            pw = jnp.asarray(pfw, jnp.float32)
            wavg = jnp.sum(gt * pw[None, :, None], axis=1) / float(sum(pfw))
            weights = wavg[:, None, :]                      # (B, 1, N)
            total = total + bcl_layer_loss(a1, weights, cfg["temperature"],
                                           total_cw, binary_gt=False)
    return total


# --------------------------- pure-JAX reference ---------------------------
def _reference_layer(a1, w_list, temperature, criterion_weights):
    norms = jnp.sqrt(jnp.sum(a1 * a1, axis=1))
    dots = jnp.einsum("bci,bcj->bij", a1, a1)
    denom = jnp.maximum(norms[:, :, None] * norms[:, None, :], 1e-8)
    sim0 = dots / denom / temperature
    loss = jnp.float32(0.0)
    for w in w_list:
        sim = sim0 - jnp.max(sim0)
        d = jnp.abs(w[:, None, :] - w[:, :, None])
        num = 1.0 - d
        pos1 = jnp.exp(sim * d)
        neg1 = jnp.exp(sim * num)
        neg2 = jnp.sum(neg1, axis=2, keepdims=True)
        logits = -jnp.sum(jnp.log(pos1 / neg2))
        for cw in criterion_weights:
            loss = loss + cw * logits
    return loss


def cl_loss_reference(f_list, gt_list, cfg):
    cws = [w for n, w in cfg["criterions"] if n == "encoder_patchseries"]
    pfw = cfg["patchforeground_weight"]
    total = jnp.float32(0.0)
    for a1, gt in zip(f_list, gt_list):
        if cfg["similarityfirst"]:
            w_list = [gt[:, p, :] for p in range(gt.shape[1])]
            total = total + _reference_layer(
                a1, w_list, cfg["temperature"], cws) / float(cfg["patchnumber"])
        else:
            pw = jnp.asarray(pfw, jnp.float32)
            wavg = jnp.sum(gt * pw[None, :, None], axis=1) / float(sum(pfw))
            total = total + _reference_layer(a1, [wavg], cfg["temperature"], cws)
    return total


if __name__ == "__main__":
    key = jax.random.PRNGKey(0)
    B = 2          # batch_size
    P = 3          # patchnumber / number of gt patch channels
    # (C, N = H*W) per encoder layer; the second layer exercises padding+masking.
    layer_shapes = [(32, 128), (16, 72)]

    cfg = dict(
        temperature=0.5,
        criterions=[("encoder_patchseries", 1.0)],
        patchforeground_weight=[1.0, 2.0, 3.0],
        patchnumber=P,
        distance_measure="cosine",
        similarityfirst=False,
    )
    # TODO(synk): cfgs.model.sample_strategy / loss_layerchoice / fea_weight_choice
    # and the CrossEntropy/L1 criterions are constructed but never used in
    # forward(); not modeled here.

    keys = jax.random.split(key, 2 * len(layer_shapes))
    f_list, gt_list, gt_bin_list = [], [], []
    for li, (C, N) in enumerate(layer_shapes):
        f_list.append(jax.random.normal(keys[2 * li], (B, C, N), jnp.float32))
        gt = jax.random.uniform(keys[2 * li + 1], (B, P, N), jnp.float32)
        gt_list.append(gt)
        gt_bin_list.append((gt > 0.5).astype(jnp.float32))

    cfg_true = dict(cfg, similarityfirst=True)
    cfg_bin = dict(cfg, similarityfirst=True, binary_gt=True)

    checks = [
        ("similarityfirst=False",
         cl_loss_forward(f_list, gt_list, cfg),
         cl_loss_reference(f_list, gt_list, cfg)),
        ("similarityfirst=True",
         cl_loss_forward(f_list, gt_list, cfg_true),
         cl_loss_reference(f_list, gt_list, cfg_true)),
        ("similarityfirst=True binary gt",
         cl_loss_forward(f_list, gt_bin_list, cfg_bin),
         cl_loss_reference(f_list, gt_bin_list, cfg_true)),
    ]
    jax.block_until_ready([c[1] for c in checks] + [c[2] for c in checks])

    for name, got, want in checks:
        if not jnp.allclose(got, want, rtol=2e-2, atol=1.0):
            raise AssertionError(f"{name}: kernel {got} vs reference {want}")

    print("KERNEL_OK")
</pallas_src>

<mosaic_0001>
module attributes {stable_mosaic.version = 11 : i64} {
  func.func @_bcl_layer_kernel(%arg0: i32, %arg1: i32, %arg2: i32, %arg3: memref<1x128x33xbf16, #tpu.memory_space<vmem>>, %arg4: memref<1x128x33xbf16, #tpu.memory_space<vmem>>, %arg5: memref<1x1x128xf32, #tpu.memory_space<vmem>>, %arg6: memref<1x1x128xf32, #tpu.memory_space<vmem>>, %arg7: memref<1x1x8x128xf32, #tpu.memory_space<vmem>>, %arg8: memref<1x1x128xf32, #tpu.memory_space<vmem>>, %arg9: memref<1x1x128xf32, #tpu.memory_space<vmem>>) attributes {dimension_semantics = [#tpu.dimension_semantics<parallel>, #tpu.dimension_semantics<parallel>, #tpu.dimension_semantics<arbitrary>], iteration_bounds = array<i64: 2, 1, 1>, scalar_prefetch = 0 : i64, scratch_operands = 2 : i64, tpu.core_type = #tpu.core_type<tc>, window_params = [{transform_indices = @transform_0, window_bounds = array<i64: 1, 128, 33>}, {transform_indices = @transform_1, window_bounds = array<i64: 1, 128, 33>}, {transform_indices = @transform_2, window_bounds = array<i64: 1, 1, 128>}, {transform_indices = @transform_3, window_bounds = array<i64: 1, 1, 128>}, {transform_indices = @transform_4, window_bounds = array<i64: 1, 1, 8, 128>}]} {
    %c0_i32 = arith.constant 0 : i32
    %0 = arith.cmpi eq, %arg2, %c0_i32 : i32
    %1 = arith.extui %0 : i1 to i32
    %c0_i32_0 = arith.constant 0 : i32
    %2 = arith.cmpi ne, %1, %c0_i32_0 : i32
    scf.if %2 {
      %cst_29 = arith.constant 0.000000e+00 : f32
      %38 = vector.broadcast %cst_29 : f32 to vector<1x1x128xf32>
      %c0_30 = arith.constant 0 : index
      %c0_31 = arith.constant 0 : index
      %c0_32 = arith.constant 0 : index
      %39 = vector.load %arg8[%c0_30, %c0_31, %c0_32] : memref<1x1x128xf32, #tpu.memory_space<vmem>>, vector<1x1x128xf32>
      tpu.vector_store %arg8[%c0_30, %c0_31, %c0_32], %38 {strides = array<i32>} : memref<1x1x128xf32, #tpu.memory_space<vmem>>, vector<1x1x128xf32>,
      %cst_33 = arith.constant 0.000000e+00 : f32
      %40 = vector.broadcast %cst_33 : f32 to vector<1x1x128xf32>
      %c0_34 = arith.constant 0 : index
      %c0_35 = arith.constant 0 : index
      %c0_36 = arith.constant 0 : index
      %41 = vector.load %arg9[%c0_34, %c0_35, %c0_36] : memref<1x1x128xf32, #tpu.memory_space<vmem>>, vector<1x1x128xf32>
      tpu.vector_store %arg9[%c0_34, %c0_35, %c0_36], %40 {strides = array<i32>} : memref<1x1x128xf32, #tpu.memory_space<vmem>>, vector<1x1x128xf32>,
    } else {
    }
    %c0 = arith.constant 0 : index
    %c0_1 = arith.constant 0 : index
    %c0_2 = arith.constant 0 : index
    %3 = vector.load %arg3[%c0, %c0_1, %c0_2] : memref<1x128x33xbf16, #tpu.memory_space<vmem>>, vector<1x128x33xbf16>
    %c0_3 = arith.constant 0 : index
    %c0_4 = arith.constant 0 : index
    %c0_5 = arith.constant 0 : index
    %4 = vector.load %arg4[%c0_3, %c0_4, %c0_5] : memref<1x128x33xbf16, #tpu.memory_space<vmem>>, vector<1x128x33xbf16>
    %cst = arith.constant dense<0.000000e+00> : vector<1x128x128xf32>
    %5 = tpu.matmul %3, %4, %cst {dimension_numbers = #tpu.dot_dimension_numbers<[2], [2], [1], [1], [0, 0, 0, 1, 1, 1], [0], [0]>} : vector<1x128x33xbf16>, vector<1x128x33xbf16>, vector<1x128x128xf32> -> vector<1x128x128xf32>
    %cst_6 = arith.constant 2.000000e+00 : f32
    %6 = vector.broadcast %cst_6 : f32 to vector<1x128x128xf32>
    %7 = arith.subf %5, %6 : vector<1x128x128xf32>
    %c0_7 = arith.constant 0 : index
    %c0_8 = arith.constant 0 : index
    %c0_9 = arith.constant 0 : index
    %8 = vector.load %arg5[%c0_7, %c0_8, %c0_9] : memref<1x1x128xf32, #tpu.memory_space<vmem>>, vector<1x1x128xf32>
    %9 = vector.shape_cast %8 : vector<1x1x128xf32> to vector<1x128xf32>
    %c0_10 = arith.constant 0 : index
    %c0_11 = arith.constant 0 : index
    %c0_12 = arith.constant 0 : index
    %10 = vector.load %arg6[%c0_10, %c0_11, %c0_12] : memref<1x1x128xf32, #tpu.memory_space<vmem>>, vector<1x1x128xf32>
    %11 = vector.shape_cast %10 : vector<1x1x128xf32> to vector<1x128xf32>
    %12 = vector.shape_cast %11 : vector<1x128xf32> to vector<1x1x128xf32>
    %13 = vector.shape_cast %9 : vector<1x128xf32> to vector<1x128x1xf32>
    %14 = vector.broadcast %12 : vector<1x1x128xf32> to vector<1x128x128xf32>
    %15 = vector.broadcast %13 : vector<1x128x1xf32> to vector<1x128x128xf32>
    %16 = arith.subf %14, %15 : vector<1x128x128xf32>
    %17 = math.absf %16 : vector<1x128x128xf32>
    %18 = arith.mulf %7, %17 : vector<1x128x128xf32>
    %19 = arith.subf %7, %18 : vector<1x128x128xf32>
    %20 = math.exp %19 : vector<1x128x128xf32>
    %cst_13 = arith.constant dense<0.000000e+00> : vector<1x128xf32>
    %21 = vector.multi_reduction <add>, %18, %cst_13 [2] : vector<1x128x128xf32> to vector<1x128xf32>
    %cst_14 = arith.constant dense<0.000000e+00> : vector<1x128xf32>
    %22 = vector.multi_reduction <add>, %20, %cst_14 [2] : vector<1x128x128xf32> to vector<1x128xf32>
    %c0_15 = arith.constant 0 : index
    %c0_16 = arith.constant 0 : index
    %c0_17 = arith.constant 0 : index
    %23 = vector.load %arg8[%c0_15, %c0_16, %c0_17] : memref<1x1x128xf32, #tpu.memory_space<vmem>>, vector<1x1x128xf32>
    %24 = vector.shape_cast %23 : vector<1x1x128xf32> to vector<1x128xf32>
    %25 = arith.addf %24, %21 : vector<1x128xf32>
    %c0_18 = arith.constant 0 : index
    %c0_19 = arith.constant 0 : index
    %c0_20 = arith.constant 0 : index
    %26 = vector.load %arg8[%c0_18, %c0_19, %c0_20] : memref<1x1x128xf32, #tpu.memory_space<vmem>>, vector<1x1x128xf32>
    %27 = vector.shape_cast %26 : vector<1x1x128xf32> to vector<1x128xf32>
    %28 = vector.shape_cast %25 : vector<1x128xf32> to vector<1x1x128xf32>
    tpu.vector_store %arg8[%c0_18, %c0_19, %c0_20], %28 {strides = array<i32>} : memref<1x1x128xf32, #tpu.memory_space<vmem>>, vector<1x1x128xf32>,
    %c0_21 = arith.constant 0 : index
    %c0_22 = arith.constant 0 : index
    %c0_23 = arith.constant 0 : index
    %29 = vector.load %arg9[%c0_21, %c0_22, %c0_23] : memref<1x1x128xf32, #tpu.memory_space<vmem>>, vector<1x1x128xf32>
    %30 = vector.shape_cast %29 : vector<1x1x128xf32> to vector<1x128xf32>
    %31 = arith.addf %30, %22 : vector<1x128xf32>
    %c0_24 = arith.constant 0 : index
    %c0_25 = arith.constant 0 : index
    %c0_26 = arith.constant 0 : index
    %32 = vector.load %arg9[%c0_24, %c0_25, %c0_26] : memref<1x1x128xf32, #tpu.memory_space<vmem>>, vector<1x1x128xf32>
    %33 = vector.shape_cast %32 : vector<1x1x128xf32> to vector<1x128xf32>
    %34 = vector.shape_cast %31 : vector<1x128xf32> to vector<1x1x128xf32>
    tpu.vector_store %arg9[%c0_24, %c0_25, %c0_26], %34 {strides = array<i32>} : memref<1x1x128xf32, #tpu.memory_space<vmem>>, vector<1x1x128xf32>,
    %c0_i32_27 = arith.constant 0 : i32
    %35 = arith.cmpi eq, %arg2, %c0_i32_27 : i32
    %36 = arith.extui %35 : i1 to i32
    %c0_i32_28 = arith.constant 0 : i32
    %37 = arith.cmpi ne, %36, %c0_i32_28 : i32
    scf.if %37 {
      %c0_29 = arith.constant 0 : index
      %c0_30 = arith.constant 0 : index
      %c0_31 = arith.constant 0 : index
      %38 = vector.load %arg8[%c0_29, %c0_30, %c0_31] : memref<1x1x128xf32, #tpu.memory_space<vmem>>, vector<1x1x128xf32>
      %39 = vector.shape_cast %38 : vector<1x1x128xf32> to vector<1x128xf32>
      %c0_32 = arith.constant 0 : index
      %c0_33 = arith.constant 0 : index
      %c0_34 = arith.constant 0 : index
      %40 = vector.load %arg9[%c0_32, %c0_33, %c0_34] : memref<1x1x128xf32, #tpu.memory_space<vmem>>, vector<1x1x128xf32>
      %41 = vector.shape_cast %40 : vector<1x1x128xf32> to vector<1x128xf32>
      %cst_35 = arith.constant 1.000000e-30 : f32
      %42 = vector.broadcast %cst_35 : f32 to vector<1x128xf32>
      %43 = arith.maximumf %41, %42 : vector<1x128xf32>
      %44 = vector.shape_cast %39 : vector<1x128xf32> to vector<1x1x128xf32>
      %cst_36 = arith.constant dense<0.000000e+00> : vector<1xf32>
      %45 = vector.multi_reduction <add>, %44, %cst_36 [1, 2] : vector<1x1x128xf32> to vector<1xf32>
      %46 = vector.shape_cast %45 : vector<1xf32> to vector<1x1x1xf32>
      %47 = vector.extract %46[0, 0, 0] : f32 from vector<1x1x1xf32>
      %48 = math.log %43 : vector<1x128xf32>
      %49 = vector.shape_cast %48 : vector<1x128xf32> to vector<1x1x128xf32>
      %cst_37 = arith.constant dense<0.000000e+00> : vector<1xf32>
      %50 = vector.multi_reduction <add>, %49, %cst_37 [1, 2] : vector<1x1x128xf32> to vector<1xf32>
      %51 = vector.shape_cast %50 : vector<1xf32> to vector<1x1x1xf32>
      %52 = vector.extract %51[0, 0, 0] : f32 from vector<1x1x1xf32>
      %cst_38 = arith.constant 1.280000e+02 : f32
      %53 = arith.mulf %cst_38, %52 : f32
      %54 = arith.subf %53, %47 : f32
      %cst_39 = arith.constant 0.000000e+00 : f32
      %55 = arith.addf %cst_39, %54 : f32
      %56 = vector.broadcast %55 : f32 to vector<1x1x8x128xf32>
      %c0_40 = arith.constant 0 : index
      %c0_41 = arith.constant 0 : index
      %c0_42 = arith.constant 0 : index
      %c0_43 = arith.constant 0 : index
      %57 = vector.load %arg7[%c0_40, %c0_41, %c0_42, %c0_43] : memref<1x1x8x128xf32, #tpu.memory_space<vmem>>, vector<1x1x8x128xf32>
      tpu.vector_store %arg7[%c0_40, %c0_41, %c0_42, %c0_43], %56 {strides = array<i32>} : memref<1x1x8x128xf32, #tpu.memory_space<vmem>>, vector<1x1x8x128xf32>,
    } else {
    }
    return
  }
  func.func @transform_0(%arg0: i32, %arg1: i32, %arg2: i32) -> (i32, i32, i32) {
    %c0_i32 = arith.constant 0 : i32
    %c0_i32_0 = arith.constant 0 : i32
    return %arg0, %arg1, %c0_i32 : i32, i32, i32
  }
  func.func @transform_1(%arg0: i32, %arg1: i32, %arg2: i32) -> (i32, i32, i32) {
    %c0_i32 = arith.constant 0 : i32
    %c0_i32_0 = arith.constant 0 : i32
    return %arg0, %arg2, %c0_i32 : i32, i32, i32
  }
  func.func @transform_2(%arg0: i32, %arg1: i32, %arg2: i32) -> (i32, i32, i32) {
    %c0_i32 = arith.constant 0 : i32
    %c0_i32_0 = arith.constant 0 : i32
    return %arg0, %c0_i32, %arg1 : i32, i32, i32
  }
  func.func @transform_3(%arg0: i32, %arg1: i32, %arg2: i32) -> (i32, i32, i32) {
    %c0_i32 = arith.constant 0 : i32
    %c0_i32_0 = arith.constant 0 : i32
    return %arg0, %c0_i32, %arg2 : i32, i32, i32
  }
  func.func @transform_4(%arg0: i32, %arg1: i32, %arg2: i32) -> (i32, i32, i32, i32) {
    %c0_i32 = arith.constant 0 : i32
    %c0_i32_0 = arith.constant 0 : i32
    %c0_i32_1 = arith.constant 0 : i32
    return %arg0, %arg1, %c0_i32, %c0_i32_0 : i32, i32, i32, i32
  }
}

</mosaic_0001>

<bundles_post_ra>
// kernel: tpu_custom_call.1
= control target key start
LH: loop header
LB: loop body
LE: loop exit
PB: predicated region body
PF: predicated region fallthrough
CT: control target
= control target key end

     0   :  { %9 = vsyncpa [#allocation5], 0  ;;  %s2758_s0 = inlined_call_operand.vmem [shape: bf16[2,128,33], index: 0, kind: input, shape index: {}]   ;;  %s2759_s1 = inlined_call_operand.vmem [shape: bf16[2,128,33], index: 1, kind: input, shape index: {}]   ;;  %s2760_s2 = inlined_call_operand.vmem [shape: f32[2,1,128], index: 2, kind: input, shape index: {}]   ;;  %s2761_s3 = inlined_call_operand.vmem [shape: f32[2,1,128], index: 3, kind: input, shape index: {}]   ;;  %s2762_s4 = inlined_call_operand.hbm [shape: f32[2,1,8,128], index: 4, kind: output, shape index: {}]  }
   0x1   :  { %11 = vsyncpa [#allocation5 + $0x1], 0  ;;  %s2138_s15 = smov 0   ;;  %s2140_s16 = smov 0  }
   0x2   :  { %s2142_s17 = smov 0   ;;  %s2144_s18 = smov 0  }
   0x3   :  { %s2146_s19 = smov 0   ;;  %s2148_s20 = smov 0  }
   0x4 LB: > { %s1771_s21 = sadd.s32 4294967295, %s2109_s20   ;;  %s1772_s22 = sadd.s32 4294967294, %s2109_s20   ;;  %s2109_s20 = sphi %s2148_s20, %s17_s20   ;;  %s2105_s19 = sphi %s2146_s19, %s2769_s19   ;;  %s2101_s18 = sphi %s2144_s18, %s2768_s18   ;;  %s2097_s17 = sphi %s2142_s17, %s2767_s17   ;;  %s2093_s16 = sphi %s2140_s16, %s2766_s16   ;;  %s2089_s15 = sphi %s2138_s15, %s2765_s15  }
   0x5   : > { %s36_s23 = sadd.s32 1, %s2105_s19  ;;  %s157_s24 = sadd.s32 1, %s2097_s17 }
   0x6   : > { %p38_p0 = scmp.ge.s32.totalorder %s36_s23, 2  ;;  %p167_p1 = scmp.ne.s32.totalorder %s2097_s17, %s2093_s16 }
   0x7   : > { %p168_p2 = scmp.eq.s32.totalorder %s1771_s21, 1  ;;  %p173_p3 = scmp.ne.s32.totalorder %s2093_s16, %s2089_s15 }
   0x8   : > { %s2771_s23 = smov (%p38_p0, %s36_s23), 0  ;;  %p174_p5 = scmp.eq.s32.totalorder %s1772_s22, 1 }
   0x9   : > { %p2178_p4 = por %p168_p2, %p167_p1  ;;  %s152_s26 = ssub.s32 %s2105_s19, %s2771_s23 }
   0xa   : > { %p1775_p6 = scmp.ge.s32.totalorder %s2109_s20, 1  ;;  %p155_p7 = scmp.eq.s32.totalorder %s152_s26, 0 }
   0xb   : > { %p2185_p8 = por %p174_p5, %p173_p3  ;;  %p236_p9 = scmp.lt.s32.totalorder %s2109_s20, 3 }
   0xc   : > { %s2191_s28 = scalar_select %p155_p7, %s2097_s17, %s157_s24  }
   0xd   : > { %p237_p10 = pnand %p1775_p6, %p236_p9 }
   0xe   : > { %p288_p11 = scmp.lt.s32.totalorder (!%p237_p10), %s2101_s18, 1  ;;  %s1870_s5 = sshll.u32 (!%p237_p10), %s2101_s18, 3 }
   0xf   : > { %240 = sbr.rel (%p237_p10) target bundleno = 1151 (0x47f), region = 36  ;;  %s1647_s8 = scalar_lea.hbm (!%p237_p10), %s2762_s4, %s1870_s5 }
  0x10   : > { %s1651_s14 = sshll.u32 (!%p237_p10), %s1647_s8, 4  ;;  %s1652_s14 = int_to_ptr.hbm [resolvable:$true] %s1651_s14 }
  0x11   : > { %s2045_s24 = sshra.s32 (!%p237_p10), %s1652_s14, 4  ;;  %s2046_s24 = int_to_ptr.hbm [resolvable:$true] %s2045_s24 }
  0x12   : > { %p2052_p1 = scmp.lt.s32.totalorder (!%p237_p10), %s2046_s24, %s2762_s4 }
  0x14   : > { %s2195_s29 = scalar_select %p288_p11, %s2101_s18, 1  ;;  %vm437_vm0 = vcmask 269312   ;;  %v554_v6 = vlaneseq  ;;  %vm1162_vm1 = vcmask 130112   ;;  %vm1166_vm2 = vcmask 195712  }
  0x15   : > { %vm1170_vm3 = vcmask 261312   ;;  %vm1174_vm4 = vcmask 326912   ;;  %vm1178_vm5 = vcmask 392512   ;;  %vm1182_vm6 = vcmask 458112   ;;  %s2047_s18 = scalar_lea.hbm %s2046_s24, 8 }
  0x16   : > { %s1873_s30 = sshll.u32 %s2195_s29, 6  ;;  %s312_s7 = scalar_lea.vmem %s2760_s2, %s2195_s29  ;;  %v2221_v8 = vshrl.u32 %v554_v6, 7  ;;  %vm1186_vm7 = vcmask 523712   ;;  %vm1190_vm8 = vcmask 589312   ;;  %vm1194_vm9 = vcmask 654912  }
  0x17   : > { %s2207_s10 = scalar_lea.vmem %s2759_s1, %s1873_s30  ;;  %s318_s13 = scalar_lea.vmem %s2761_s3, %s2195_s29  ;;  %v2225_v10 = vld [vmem:[%s312_s7] ss:$0 sm:$0xff]  ;;  %vm1198_vm10 = vcmask 720512   ;;  %vm1202_vm11 = vcmask 786112   ;;  %vm1206_vm12 = vcmask 851712   ;;  %vm1210_vm13 = vcmask 917312  }
  0x18   : > { %v1890_v0 = vld [vmem:[%s2207_s10 + $0x38] sm:$0xff]  ;;  %v1889_v2 = vld [vmem:[%s2207_s10 + $0x30] sm:$0xff]  ;;  %v1888_v4 = vld [vmem:[%s2207_s10 + $0x28] sm:$0xff]  ;;  %1976 = vset.pattern.permute.xlu0 %v2221_v8  ;;  %v580_v13 = vadd.s32 32, %v2221_v8  ;;  %v568_v14 = vadd.s32 16, %v2221_v8  ;;  %v562_v15 = vadd.s32 8, %v2221_v8  ;;  %s2249_s22 = scalar_lea.vmem %s2758_s0, %s1873_s30  ;;  %p2048_p12 = scmp.ne.s32.totalorder %s2046_s24, %s2047_s18 }
  0x19   : > { %v484_v1 = vsel %vm437_vm0, %v1890_v0, 0  ;;  %v481_v3 = vsel %vm437_vm0, %v1889_v2, 0  ;;  %v478_v5 = vsel %vm437_vm0, %v1888_v4, 0  ;;  %v1887_v7 = vld [vmem:[%s2207_s10 + $0x20] sm:$0xff]  ;;  %v1886_v11 = vld [vmem:[%s2207_s10 + $0x18] sm:$0xff]  ;;  %v1885_v16 = vld [vmem:[%s2207_s10 + $0x10] sm:$0xff] }
  0x1a   : > { %486 = vmatpush.bf16.xpose.msra.mxu0 %v484_v1  ;;  %1891 = vmatpush.bf16.xpose.msra.mxu1 %v484_v1  ;;  %v475_v9 = vsel %vm437_vm0, %v1887_v7, 0  ;;  %v472_v12 = vsel %vm437_vm0, %v1886_v11, 0  ;;  %v469_v17 = vsel %vm437_vm0, %v1885_v16, 0  ;;  %v1884_v18 = vld [vmem:[%s2207_s10 + $0x8] sm:$0xff]  ;;  %v586_v20 = vadd.s32 40, %v2221_v8  ;;  %v1883_v22 = vld [vmem:[%s2207_s10] sm:$0xff]  ;;  %p2049_p13 = pnand %p2048_p12, %p2178_p4 }
  0x1b   : > { %1892 = vmatpush.bf16.xpose.msra.mxu2 %v484_v1  ;;  %1893 = vmatpush.bf16.xpose.msra.mxu3 %v484_v1  ;;  %v466_v19 = vsel %vm437_vm0, %v1884_v18, 0  ;;  %v574_v21 = vadd.s32 24, %v2221_v8  ;;  %v463_v23 = vsel %vm437_vm0, %v1883_v22, 0  ;;  %v616_v24 = vadd.s32 80, %v2221_v8  ;;  %v1875_v25 = vld [vmem:[%s2249_s22] sm:$0xff]  ;;  %v1877_v26 = vld [vmem:[%s2249_s22 + $0x10] sm:$0xff] }
  0x1c   : > { %1980 = vset.pattern.permute.xlu2 %v580_v13  ;;  %1978 = vset.pattern.permute.xlu1 %v568_v14  ;;  %v592_v27 = vadd.s32 48, %v2221_v8  ;;  %v1879_v28 = vld [vmem:[%s2249_s22 + $0x20] sm:$0xff]  ;;  %v604_v29 = vadd.s32 64, %v2221_v8  ;;  %v1876_v30 = vld [vmem:[%s2249_s22 + $0x8] sm:$0xff]  ;;  %v1878_v31 = vld [vmem:[%s2249_s22 + $0x18] sm:$0xff]  ;;  %v598_v32 = vadd.s32 56, %v2221_v8  ;;  %p2050_p0 = pneg %p2049_p13 }
  0x1d   : > { %v1880_v33 = vld [vmem:[%s2249_s22 + $0x28] sm:$0xff]  ;;  %v610_v34 = vadd.s32 72, %v2221_v8  ;;  %v622_v35 = vadd.s32 88, %v2221_v8  ;;  %v1881_v36 = vld [vmem:[%s2249_s22 + $0x30] sm:$0xff]  ;;  %v1882_v38 = vld [vmem:[%s2249_s22 + $0x38] sm:$0xff]  ;;  %v628_v51 = vadd.s32 96, %v2221_v8 }
  0x1e   : > { %v2286_v40 = vld [vmem:[%s318_s13] ss:$0 sm:$0xff]  ;;  %v640_v52 = vadd.s32 112, %v2221_v8  ;;  %v634_v53 = vadd.s32 104, %v2221_v8  ;;  %vm1214_vm14 = vcmask 982912   ;;  %vm1218_vm15 = vcmask 1048512  }
  0x1f   : > { %s284_s29 = sand.u32 1, %s2093_s16  }
  0x20   : > { %558 = vperm.xlu0 %1976, %v2225_v10   ;;  %s1776_s30 = sshll.u32 %s284_s29, 3  ;;  %s1636_s22 = scalar_lea.sflag [#allocation5], %s284_s29 }
  0x21   : > { %s286_s11 = scalar_lea.vmem [#allocation4], %s1776_s30  ;;  %s2051_s30 = scalar_lea.hbm %s2762_s4, 16 }
  0x22   : > { %487 = vmatpush.bf16.xpose.msra.mxu0 %v481_v3  ;;  %1894 = vmatpush.bf16.xpose.msra.mxu1 %v481_v3  ;;  %s1649_s12 = sshll.u32 %s286_s11, 4  ;;  %p2053_p2 = scmp.lt.s32.totalorder %s2051_s30, %s2047_s18  ;;  %s1650_s12 = int_to_ptr.vmem [resolvable:$true] %s1649_s12 }
  0x23   : > { %1895 = vmatpush.bf16.xpose.msra.mxu2 %v481_v3  ;;  %1896 = vmatpush.bf16.xpose.msra.mxu3 %v481_v3 }
  0x24   : > { %582 = vperm.xlu2 %1980, %v2225_v10   ;;  %570 = vperm.xlu1 %1978, %v2225_v10   ;;  %p2054_p3 = por %p2053_p2, %p2052_p1 }
  0x26   : > { %p2055_p5 = pnand %p2054_p3, %p2050_p0 }
  0x28   : > { %1977 = vset.pattern.permute.xlu0 %v562_v15 }
  0x2a   : > { %488 = vmatpush.bf16.xpose.msra.mxu0 %v478_v5  ;;  %1897 = vmatpush.bf16.xpose.msra.mxu1 %v478_v5 }
  0x2b   : > { %1898 = vmatpush.bf16.xpose.msra.mxu2 %v478_v5  ;;  %1899 = vmatpush.bf16.xpose.msra.mxu3 %v478_v5 }
  0x2c   : > { %1981 = vset.pattern.permute.xlu2 %v586_v20  ;;  %1979 = vset.pattern.permute.xlu1 %v574_v21 }
  0x30   : > { %564 = vperm.xlu0 %1977, %v2225_v10  }
  0x32   : > { %489 = vmatpush.bf16.xpose.msra.mxu0 %v475_v9  ;;  %1900 = vmatpush.bf16.xpose.msra.mxu1 %v475_v9 }
  0x33   : > { %1901 = vmatpush.bf16.xpose.msra.mxu2 %v475_v9  ;;  %1902 = vmatpush.bf16.xpose.msra.mxu3 %v475_v9 }
  0x34   : > { %588 = vperm.xlu2 %1981, %v2225_v10   ;;  %576 = vperm.xlu1 %1979, %v2225_v10  }
  0x38   : > { %1986 = vset.pattern.permute.xlu0 %v616_v24 }
  0x3a   : > { %490 = vmatpush.bf16.xpose.msra.mxu0 %v472_v12  ;;  %1903 = vmatpush.bf16.xpose.msra.mxu1 %v472_v12 }
  0x3b   : > { %1904 = vmatpush.bf16.xpose.msra.mxu2 %v472_v12  ;;  %1905 = vmatpush.bf16.xpose.msra.mxu3 %v472_v12 }
  0x3c   : > { %1982 = vset.pattern.permute.xlu2 %v592_v27  ;;  %1984 = vset.pattern.permute.xlu1 %v604_v29 }
  0x40   : > { %618 = vperm.xlu0 %1986, %v2225_v10  }
  0x42   : > { %491 = vmatpush.bf16.xpose.msra.mxu0 %v469_v17  ;;  %1906 = vmatpush.bf16.xpose.msra.mxu1 %v469_v17 }
  0x43   : > { %1907 = vmatpush.bf16.xpose.msra.mxu2 %v469_v17  ;;  %1908 = vmatpush.bf16.xpose.msra.mxu3 %v469_v17 }
  0x44   : > { %594 = vperm.xlu2 %1982, %v2225_v10   ;;  %606 = vperm.xlu1 %1984, %v2225_v10  }
  0x48   : > { %1988 = vset.pattern.permute.xlu0 %v628_v51 }
  0x4a   : > { %492 = vmatpush.bf16.xpose.msra.mxu0 %v466_v19  ;;  %1909 = vmatpush.bf16.xpose.msra.mxu1 %v466_v19 }
  0x4b   : > { %1910 = vmatpush.bf16.xpose.msra.mxu2 %v466_v19  ;;  %1911 = vmatpush.bf16.xpose.msra.mxu3 %v466_v19 }
  0x4c   : > { %1983 = vset.pattern.permute.xlu2 %v598_v32  ;;  %1989 = vset.pattern.permute.xlu1 %v634_v53 }
  0x52   : > { %493 = vmatpush.bf16.xpose.msra.mxu0 %v463_v23  ;;  %1912 = vmatpush.bf16.xpose.msra.mxu1 %v463_v23 }
  0x53   : > { %1913 = vmatpush.bf16.xpose.msra.mxu2 %v463_v23  ;;  %1914 = vmatpush.bf16.xpose.msra.mxu3 %v463_v23 }
  0x54   : > { %600 = vperm.xlu2 %1983, %v2225_v10  }
  0x59   : > { %1845 = vmatmul.msk.bf16.vlgmr.msra.gmra.mxu0 %vm437_vm0, %v1875_v25  ;;  %1847 = vmatmul.msk.bf16.vlgmr.msra.gmra.mxu1 %vm437_vm0, %v1877_v26 }
  0x5a   : > { %1849 = vmatmul.msk.bf16.vlgmr.msra.gmra.mxu2 %vm437_vm0, %v1879_v28  ;;  %1851 = vmatmul.msk.bf16.vlgmr.msra.gmra.mxu3 %vm437_vm0, %v1881_v36 }
  0x5c   : > { %1985 = vset.pattern.permute.xlu2 %v610_v34 }
  0x64   : > { %612 = vperm.xlu2 %1985, %v2225_v10  }
  0x69   : > { %1846 = vmatmul.msk.bf16.gmra.mxu0 %vm437_vm0, %v1876_v30  ;;  %1848 = vmatmul.msk.bf16.gmra.mxu1 %vm437_vm0, %v1878_v31 }
  0x6a   : > { %1850 = vmatmul.msk.bf16.gmra.mxu2 %vm437_vm0, %v1880_v33  ;;  %1852 = vmatmul.msk.bf16.gmra.mxu3 %vm437_vm0, %v1882_v38  ;;  %vm1607_vm0 = vcmask 1040384  }
  0x6c   : > { %1987 = vset.pattern.permute.xlu2 %v622_v35 }
  0x74   : > { %624 = vperm.xlu2 %1987, %v2225_v10  }
  0x7c   : > { %1990 = vset.pattern.permute.xlu2 %v640_v52 }
  0x7e   : > { %v583_v39 = vpop.permute.xlu2 %582 }
  0x7f   : > { %v657_v42 = vsub.f32 %v2286_v40, %v583_v39 }
  0x81   : > { %v673_v48 = vand.u32 2147483647, %v657_v42 }
  0x8e   : > { %v589_v43 = vpop.permute.xlu2 %588 }
  0x8f   : > { %v658_v57 = vsub.f32 %v2286_v40, %v589_v43 }
  0x91   : > { %v674_v1 = vand.u32 2147483647, %v658_v57 }
  0x92   : > { %v559_v37 = vpop.permute.xlu0 %558 }
  0x93   : > { %v653_v41 = vsub.f32 %v2286_v40, %v559_v37 }
  0x95   : > { %v669_v44 = vand.u32 2147483647, %v653_v41 }
  0x96   : > { %v571_v60 = vpop.permute.xlu1 %570 }
  0x97   : > { %v655_v7 = vsub.f32 %v2286_v40, %v571_v60 }
  0x99   : > { %v671_v17 = vand.u32 2147483647, %v655_v7 }
  0x9e   : > { %v595_v62 = vpop.permute.xlu2 %594 }
  0x9f   : > { %v659_v9 = vsub.f32 %v2286_v40, %v595_v62 }
  0xa1   : > { %v675_v18 = vand.u32 2147483647, %v659_v9 }
  0xa2   : > { %v565_v45 = vpop.permute.xlu0 %564 }
  0xa3   : > { %v654_v56 = vsub.f32 %v2286_v40, %v565_v45 }
  0xa5   : > { %v670_v61 = vand.u32 2147483647, %v654_v56  ;;  %v646_v56 = vadd.s32 120, %v2221_v8 }
  0xa6   : > { %v577_v14 = vpop.permute.xlu1 %576 }
  0xa7   : > { %v656_v23 = vsub.f32 %v2286_v40, %v577_v14 }
  0xa9   : > { %v672_v28 = vand.u32 2147483647, %v656_v23 }
  0xae   : > { %v601_v13 = vpop.permute.xlu2 %600 }
  0xaf   : > { %v660_v22 = vsub.f32 %v2286_v40, %v601_v13 }
  0xb1   : > { %v676_v27 = vand.u32 2147483647, %v660_v22 }
  0xb6   : > { %v607_v38 = vpop.permute.xlu1 %606 }
  0xb7   : > { %v661_v41 = vsub.f32 %v2286_v40, %v607_v38 }
  0xb9   : > { %v677_v42 = vand.u32 2147483647, %v661_v41 }
  0xbe   : > { %v613_v53 = vpop.permute.xlu2 %612 }
  0xbf   : > { %v662_v9 = vsub.f32 %v2286_v40, %v613_v53 }
  0xc1   : > { %v678_v14 = vand.u32 2147483647, %v662_v9 }
  0xd6   : > { %v495_v46 = vpop.f32.mrf.mxu0  ;;  %v505_v47 = vpop.f32.mrf.mxu1 }
  0xd7   : > { %v2290_v49 = vadd.f32 -2.0, %v495_v46  ;;  %v2292_v50 = vadd.f32 -2.0, %v505_v47  ;;  %v619_v46 = vpop.permute.xlu0 %618 }
  0xd8   : > { %v663_v47 = vsub.f32 %v2286_v40, %v619_v46 }
  0xd9   : > { %v2298_v54 = vmul.f32 %v2292_v50, %v673_v48  ;;  %v2301_v55 = vmul.f32 %v2290_v49, %v669_v44 }
  0xda   : > { %v679_v51 = vand.u32 2147483647, %v663_v47 }
  0xdb   : > { %757 = vadd.xlane.f32.xlu0 %v2298_v54  ;;  %v705_v58 = vsub.f32 %v2292_v50, %v2298_v54  ;;  %749 = vadd.xlane.f32.xlu1 %v2301_v55  ;;  %v701_v59 = vsub.f32 %v2290_v49, %v2301_v55 }
  0xdd   : > { %v515_v37 = vpop.f32.mrf.mxu2 }
  0xde   : > { %v497_v63 = vpop.f32.mrf.mxu0  ;;  %v507_v0 = vpop.f32.mrf.mxu1  ;;  %v2347_v39 = vadd.f32 -2.0, %v515_v37 }
  0xdf   : > { %v2311_v2 = vadd.f32 -2.0, %v497_v63  ;;  %v2313_v3 = vadd.f32 -2.0, %v507_v0 }
  0xe0   : > { %v2351_v43 = vmul.f32 %v2347_v39, %v677_v42 }
  0xe1   : > { %v2316_v4 = vmul.f32 %v2313_v3, %v674_v1  ;;  %v2319_v5 = vmul.f32 %v2311_v2, %v670_v61  ;;  %v625_v61 = vpop.permute.xlu2 %624 }
  0xe2   : > { %v709_v45 = vsub.f32 %v2347_v39, %v2351_v43  ;;  %v664_v63 = vsub.f32 %v2286_v40, %v625_v61 }
  0xe3   : > { %v706_v11 = vsub.f32 %v2313_v3, %v2316_v4  ;;  %759 = vadd.xlane.f32.xlu1 %v2316_v4  ;;  %751 = vadd.xlane.f32.xlu0 %v2319_v5  ;;  %v702_v12 = vsub.f32 %v2311_v2, %v2319_v5 }
  0xe4   : > { %v680_v1 = vand.u32 2147483647, %v664_v63 }
  0xe5   : > { %v517_v44 = vpop.f32.mrf.mxu2 }
  0xe6   : > { %v500_v15 = vpop.f32.mrf.mxu0  ;;  %v510_v16 = vpop.f32.mrf.mxu1  ;;  %v1862_v13 = vadd.f32 -2.0, %v517_v44 }
  0xe7   : > { %v2329_v19 = vadd.f32 -2.0, %v500_v15  ;;  %v1859_v20 = vadd.f32 -2.0, %v510_v16 }
  0xe8   : > { %v694_v15 = vmul.f32 %v1862_v13, %v678_v14 }
  0xe9   : > { %v2332_v21 = vmul.f32 %v2329_v19, %v671_v17  ;;  %v691_v24 = vmul.f32 %v1859_v20, %v675_v18 }
  0xea   : > { %v710_v18 = vsub.f32 %v1862_v13, %v694_v15 }
  0xeb   : > { %753 = vadd.xlane.f32.xlu2 %v2332_v21  ;;  %v703_v25 = vsub.f32 %v2329_v19, %v2332_v21  ;;  %v707_v26 = vsub.f32 %v1859_v20, %v691_v24  ;;  %v727_v19 = vmul.f32 1.442695, %v706_v11 }
  0xec   : > { %v735_v22 = vmul.f32 1.442695, %v710_v18 }
  0xed   : > { %v520_v48 = vpop.f32.mrf.mxu2 }
  0xee   : > { %v502_v29 = vpop.f32.mrf.mxu0  ;;  %v512_v30 = vpop.f32.mrf.mxu1  ;;  %v2359_v52 = vadd.f32 -2.0, %v520_v48 }
  0xef   : > { %v1856_v31 = vadd.f32 -2.0, %v502_v29  ;;  %v2339_v32 = vadd.f32 -2.0, %v512_v30 }
  0xf0   : > { %v2363_v57 = vmul.f32 %v2359_v52, %v679_v51 }
  0xf1   : > { %v2342_v33 = vmul.f32 %v2339_v32, %v676_v27  ;;  %v688_v34 = vmul.f32 %v1856_v31, %v672_v28 }
  0xf2   : > { %v711_v60 = vsub.f32 %v2359_v52, %v2363_v57 }
  0xf3   : > { %v708_v35 = vsub.f32 %v2339_v32, %v2342_v33  ;;  %763 = vadd.xlane.f32.xlu1 %v2342_v33  ;;  %761 = vadd.xlane.f32.xlu2 %v691_v24  ;;  %v704_v36 = vsub.f32 %v1856_v31, %v688_v34 }
  0xf4   : > { %755 = vadd.xlane.f32.xlu0 %v688_v34  ;;  %v737_v33 = vmul.f32 1.442695, %v711_v60 }
  0xf5   : > { %v522_v62 = vpop.f32.mrf.mxu2  ;;  %v723_v16 = vmul.f32 1.442695, %v704_v36 }
  0xf6   : > { %v2368_v0 = vadd.f32 -2.0, %v522_v62 }
  0xf7   : > { %1997 = vpow2.f32 %v723_v16 }
  0xf8   : > { %v2372_v7 = vmul.f32 %v2368_v0, %v680_v1 }
  0xfa   : > { %v712_v8 = vsub.f32 %v2368_v0, %v2372_v7 }
  0xfc   : > { %v739_v39 = vmul.f32 1.442695, %v712_v8 }
  0xfd   : > { %v1998_v17 = vpop.eup %1997 }
 0x108   : > { %630 = vperm.xlu0 %1988, %v2225_v10  }
 0x10b   : > { %642 = vperm.xlu2 %1990, %v2225_v10  }
 0x10c   : > { %636 = vperm.xlu1 %1989, %v2225_v10  }
 0x113   : > { %1991 = vset.pattern.permute.xlu2 %v646_v56 }
 0x11b   : > { %648 = vperm.xlu2 %1991, %v2225_v10   ;;  %v729_v10 = vmul.f32 1.442695, %v707_v26 }
 0x11d   : > { %1999 = vpow2.f32 %v729_v10 }
 0x11e   : > { %2001 = vpow2.f32 %v735_v22 }
 0x123   : > { %v2000_v30 = vpop.eup %1999 }
 0x124   : > { %v2002_v37 = vpop.eup %2001 }
 0x132   : > { %765 = vadd.xlane.f32.xlu0 %v2351_v43 }
 0x136   : > { %767 = vadd.xlane.f32.xlu1 %v694_v15 }
 0x13a   : > { %771 = vadd.xlane.f32.xlu0 %v2372_v7 }
 0x144   : > { %769 = vadd.xlane.f32.xlu2 %v2363_v57  ;;  %v2111_v57 = vmov 0  }
 0x145   : > { %1992 = vset.pattern.permute.xlu2 %v2111_v57  ;;  %1994 = vset.pattern.permute.xlu1 %v2111_v57 }
 0x146   : > { %1993 = vset.pattern.permute.xlu0 %v2111_v57 }
 0x14c   : > { %787 = vadd.xlane.f32.xlu2 %v1998_v17  ;;  %v525_v17 = vpop.f32.mrf.mxu3 }
 0x14e   : > { %v750_v20 = vpop.xlane.xlu1 %749  ;;  %v2380_v23 = vpop.xlane.xlu0 %757 }
 0x14f   : > { %v830_v24 = vperm.slane %v750_v20, 0  ;;  %v831_v27 = vperm.slane %v750_v20, 1  ;;  %v832_v28 = vperm.slane %v750_v20, 2  ;;  %v833_v29 = vperm.slane %v750_v20, 3 }
 0x150   : > { %v834_v31 = vperm.slane %v750_v20, 4  ;;  %v835_v34 = vperm.slane %v750_v20, 5  ;;  %v836_v26 = vperm.slane %v750_v20, 6  ;;  %v837_v36 = vperm.slane %v750_v20, 7 }
 0x151   : > { %958 = vst [vmem:[#allocation1] ss:$9 sm:$0xff] %v830_v24  ;;  %v866_v49 = vperm.slane %v2380_v23, 4  ;;  %v867_v55 = vperm.slane %v2380_v23, 5 }
 0x152   : > { %960 = vst [vmem:[#allocation1 + $0x1] ss:$9 sm:$0xff] %v831_v27 }
 0x153   : > { %962 = vst [vmem:[#allocation1 + $0x2] ss:$9 sm:$0xff] %v832_v28 }
 0x154   : > { %793 = vadd.xlane.f32.xlu2 %v2000_v30  ;;  %964 = vst [vmem:[#allocation1 + $0x3] ss:$9 sm:$0xff] %v833_v29 }
 0x155   : > { %966 = vst [vmem:[#allocation1 + $0x4] ss:$9 sm:$0xff] %v834_v31 }
 0x156   : > { %968 = vst [vmem:[#allocation1 + $0x5] ss:$9 sm:$0xff] %v835_v34  ;;  %v752_v38 = vpop.xlane.xlu0 %751 }
 0x157   : > { %970 = vst [vmem:[#allocation1 + $0x6] ss:$9 sm:$0xff] %v836_v26  ;;  %v838_v41 = vperm.slane %v752_v38, 0  ;;  %v839_v42 = vperm.slane %v752_v38, 1  ;;  %v840_v44 = vperm.slane %v752_v38, 2  ;;  %v841_v47 = vperm.slane %v752_v38, 3  ;;  %v527_v26 = vpop.f32.mrf.mxu3 }
 0x158   : > { %972 = vst [vmem:[#allocation1 + $0x7] ss:$9 sm:$0xff] %v837_v36  ;;  %v842_v48 = vperm.slane %v752_v38, 4  ;;  %v843_v51 = vperm.slane %v752_v38, 5  ;;  %v844_v53 = vperm.slane %v752_v38, 6  ;;  %v845_v56 = vperm.slane %v752_v38, 7 }
 0x15c   : > { %799 = vadd.xlane.f32.xlu2 %v2002_v37  ;;  %v2390_v37 = vpop.xlane.xlu1 %759 }
 0x15d   : > { %v873_v11 = vperm.slane %v2390_v37, 3 }
 0x15e   : > { %v754_v61 = vpop.xlane.xlu2 %753 }
 0x15f   : > { %v2382_v46 = vld [vmem:[#allocation1] sm:$0xff]  ;;  %v846_v62 = vperm.slane %v754_v61, 0  ;;  %v847_v63 = vperm.slane %v754_v61, 1  ;;  %v848_v1 = vperm.slane %v754_v61, 2  ;;  %v849_v13 = vperm.slane %v754_v61, 3 }
 0x160   : > { %974 = vst [vmem:[#allocation1] ss:$9 sm:$0xff] %v838_v41  ;;  %v850_v14 = vperm.slane %v754_v61, 4  ;;  %v851_v15 = vperm.slane %v754_v61, 5  ;;  %v852_v16 = vperm.slane %v754_v61, 6  ;;  %v853_v10 = vperm.slane %v754_v61, 7 }
 0x161   : > { %975 = vst [vmem:[#allocation1 + $0x1] ss:$9 sm:$0xff] %v839_v42  ;;  %v530_v42 = vpop.f32.mrf.mxu3 }
 0x162   : > { %976 = vst [vmem:[#allocation1 + $0x2] ss:$9 sm:$0xff] %v840_v44 }
 0x163   : > { %977 = vst [vmem:[#allocation1 + $0x3] ss:$9 sm:$0xff] %v841_v47  ;;  %v2393_v47 = vadd.f32 -2.0, %v530_v42 }
 0x164   : > { %978 = vst [vmem:[#allocation1 + $0x4] ss:$9 sm:$0xff] %v842_v48  ;;  %v717_v48 = vmul.f32 1.442695, %v701_v59  ;;  %v868_v59 = vperm.slane %v2380_v23, 6 }
 0x165   : > { %979 = vst [vmem:[#allocation1 + $0x5] ss:$9 sm:$0xff] %v843_v51  ;;  %v862_v51 = vperm.slane %v2380_v23, 0 }
 0x166   : > { %980 = vst [vmem:[#allocation1 + $0x6] ss:$9 sm:$0xff] %v844_v53  ;;  %v2386_v24 = vpop.xlane.xlu2 %761  ;;  %2003 = vpow2.f32 %v717_v48 }
 0x167   : > { %981 = vst [vmem:[#allocation1 + $0x7] ss:$9 sm:$0xff] %v845_v56  ;;  %v756_v18 = vpop.xlane.xlu0 %755  ;;  %v863_v56 = vperm.slane %v2380_v23, 1  ;;  %v879_v43 = vperm.slane %v2386_v24, 1  ;;  %v881_v5 = vperm.slane %v2386_v24, 3  ;;  %v882_v0 = vperm.slane %v2386_v24, 4 }
 0x168   : > { %v854_v20 = vperm.slane %v756_v18, 0  ;;  %v855_v22 = vperm.slane %v756_v18, 1  ;;  %v856_v27 = vperm.slane %v756_v18, 2  ;;  %v857_v29 = vperm.slane %v756_v18, 3 }
 0x169   : > { %v858_v30 = vperm.slane %v756_v18, 4  ;;  %v859_v31 = vperm.slane %v756_v18, 5  ;;  %v860_v34 = vperm.slane %v756_v18, 6  ;;  %v861_v36 = vperm.slane %v756_v18, 7 }
 0x16a   : > { %v883_v7 = vperm.slane %v2386_v24, 5 }
 0x16c   : > { %v2004_v18 = vpop.eup %2003 }
 0x16e   : > { %v2384_v9 = vld [vmem:[#allocation1] sm:$0xff]  ;;  %v643_v38 = vpop.permute.xlu2 %642 }
 0x16f   : > { %983 = vst [vmem:[#allocation1] ss:$9 sm:$0xff] %v846_v62  ;;  %v667_v41 = vsub.f32 %v2286_v40, %v643_v38  ;;  %v864_v62 = vperm.slane %v2380_v23, 2 }
 0x170   : > { %984 = vst [vmem:[#allocation1 + $0x1] ss:$9 sm:$0xff] %v847_v63  ;;  %v865_v63 = vperm.slane %v2380_v23, 3 }
 0x171   : > { %985 = vst [vmem:[#allocation1 + $0x2] ss:$9 sm:$0xff] %v848_v1  ;;  %v683_v44 = vand.u32 2147483647, %v667_v41  ;;  %v2408_v1 = vpop.xlane.xlu1 %763  ;;  %v532_v41 = vpop.f32.mrf.mxu3 }
 0x172   : > { %986 = vst [vmem:[#allocation1 + $0x3] ss:$9 sm:$0xff] %v849_v13  ;;  %v1868_v4 = vadd.f32 -2.0, %v532_v41  ;;  %v890_v32 = vperm.slane %v2408_v1, 4 }
 0x173   : > { %987 = vst [vmem:[#allocation1 + $0x4] ss:$9 sm:$0xff] %v850_v14  ;;  %v2400_v53 = vmul.f32 %v2393_v47, %v683_v44  ;;  %v721_v14 = vmul.f32 1.442695, %v703_v25  ;;  %v870_v25 = vperm.slane %v2390_v37, 0  ;;  %v2428_v44 = vadd.f32 -2.0, %v527_v26 }
 0x174   : > { %988 = vst [vmem:[#allocation1 + $0x5] ss:$9 sm:$0xff] %v851_v15  ;;  %v869_v15 = vperm.slane %v2380_v23, 7  ;;  %v876_v26 = vperm.slane %v2390_v37, 6 }
 0x175   : > { %989 = vst [vmem:[#allocation1 + $0x6] ss:$9 sm:$0xff] %v852_v16  ;;  %777 = vadd.xlane.f32.xlu1 %v2400_v53  ;;  %v1865_v16 = vadd.f32 -2.0, %v525_v17  ;;  %2005 = vpow2.f32 %v721_v14  ;;  %v719_v14 = vmul.f32 1.442695, %v702_v12  ;;  %v715_v8 = vsub.f32 %v2393_v47, %v2400_v53 }
 0x176   : > { %990 = vst [vmem:[#allocation1 + $0x7] ss:$9 sm:$0xff] %v853_v10  ;;  %v649_v21 = vpop.permute.xlu2 %648  ;;  %v725_v12 = vmul.f32 1.442695, %v705_v58  ;;  %v731_v58 = vmul.f32 1.442695, %v708_v35 }
 0x177   : > { %v745_v50 = vmul.f32 1.442695, %v715_v8  ;;  %v886_v53 = vperm.slane %v2408_v1, 0  ;;  %v891_v35 = vperm.slane %v2408_v1, 5 }
 0x17a   : > { %v631_v13 = vpop.permute.xlu0 %630 }
 0x17b   : > { %v665_v10 = vsub.f32 %v2286_v40, %v631_v13  ;;  %v2006_v42 = vpop.eup %2005 }
 0x17d   : > { %v2388_v28 = vld [vmem:[#allocation1] sm:$0xff]  ;;  %781 = vadd.xlane.f32.xlu1 %v2004_v18  ;;  %v884_v18 = vperm.slane %v2386_v24, 6 }
 0x17e   : > { %992 = vst [vmem:[#allocation1] ss:$9 sm:$0xff] %v854_v20  ;;  %v681_v20 = vand.u32 2147483647, %v665_v10 }
 0x17f   : > { %993 = vst [vmem:[#allocation1 + $0x1] ss:$9 sm:$0xff] %v855_v22  ;;  %v637_v22 = vpop.permute.xlu1 %636 }
 0x180   : > { %994 = vst [vmem:[#allocation1 + $0x2] ss:$9 sm:$0xff] %v856_v27  ;;  %v697_v27 = vmul.f32 %v1865_v16, %v681_v20  ;;  %v885_v20 = vperm.slane %v2386_v24, 7 }
 0x181   : > { %995 = vst [vmem:[#allocation1 + $0x3] ss:$9 sm:$0xff] %v857_v29  ;;  %v666_v29 = vsub.f32 %v2286_v40, %v637_v22 }
 0x182   : > { %996 = vst [vmem:[#allocation1 + $0x4] ss:$9 sm:$0xff] %v858_v30  ;;  %773 = vadd.xlane.f32.xlu0 %v697_v27  ;;  %v713_v30 = vsub.f32 %v1865_v16, %v697_v27  ;;  %v880_v16 = vperm.slane %v2386_v24, 2  ;;  %v888_v27 = vperm.slane %v2408_v1, 2 }
 0x183   : > { %997 = vst [vmem:[#allocation1 + $0x5] ss:$9 sm:$0xff] %v859_v31  ;;  %v682_v23 = vand.u32 2147483647, %v666_v29  ;;  %v668_v31 = vsub.f32 %v2286_v40, %v649_v21  ;;  %v874_v40 = vperm.slane %v2390_v37, 4  ;;  %v889_v29 = vperm.slane %v2408_v1, 3 }
 0x184   : > { %998 = vst [vmem:[#allocation1 + $0x6] ss:$9 sm:$0xff] %v860_v34  ;;  %v741_v17 = vmul.f32 1.442695, %v713_v30  ;;  %v871_v34 = vperm.slane %v2390_v37, 1 }
 0x185   : > { %999 = vst [vmem:[#allocation1 + $0x7] ss:$9 sm:$0xff] %v861_v36  ;;  %v872_v36 = vperm.slane %v2390_v37, 2  ;;  %v684_v3 = vand.u32 2147483647, %v668_v31  ;;  %785 = vadd.xlane.f32.xlu1 %v2006_v42  ;;  %v2433_v48 = vmul.f32 %v2428_v44, %v682_v23 }
 0x186   : > { %2007 = vpow2.f32 %v741_v17 }
 0x187   : > { %2009 = vpow2.f32 %v727_v19  ;;  %v892_v19 = vperm.slane %v2408_v1, 6  ;;  %v714_v23 = vsub.f32 %v2428_v44, %v2433_v48 }
 0x189   : > { %v743_v60 = vmul.f32 1.442695, %v714_v23 }
 0x18a   : > { %775 = vadd.xlane.f32.xlu0 %v2433_v48 }
 0x18c   : > { %v2403_v61 = vld [vmem:[#allocation1] sm:$0xff] }
 0x18d   : > { %1001 = vst [vmem:[#allocation1] ss:$9 sm:$0xff] %v862_v51  ;;  %v700_v51 = vmul.f32 %v1868_v4, %v684_v3 }
 0x18e   : > { %1002 = vst [vmem:[#allocation1 + $0x1] ss:$9 sm:$0xff] %v863_v56  ;;  %v875_v56 = vperm.slane %v2390_v37, 5 }
 0x18f   : > { %1003 = vst [vmem:[#allocation1 + $0x2] ss:$9 sm:$0xff] %v864_v62  ;;  %v716_v62 = vsub.f32 %v1868_v4, %v700_v51 }
 0x190   : > { %1004 = vst [vmem:[#allocation1 + $0x3] ss:$9 sm:$0xff] %v865_v63  ;;  %v877_v63 = vperm.slane %v2390_v37, 7  ;;  %v878_v37 = vperm.slane %v2386_v24, 0  ;;  %v887_v24 = vperm.slane %v2408_v1, 1 }
 0x191   : > { %1005 = vst [vmem:[#allocation1 + $0x4] ss:$9 sm:$0xff] %v866_v49  ;;  %v2008_v49 = vpop.eup %2007 }
 0x192   : > { %1006 = vst [vmem:[#allocation1 + $0x5] ss:$9 sm:$0xff] %v867_v55  ;;  %v733_v55 = vmul.f32 1.442695, %v709_v45  ;;  %805 = vadd.xlane.f32.xlu2 %v2008_v49  ;;  %v2010_v13 = vpop.eup %2009  ;;  %779 = vadd.xlane.f32.xlu0 %v700_v51 }
 0x193   : > { %1007 = vst [vmem:[#allocation1 + $0x6] ss:$9 sm:$0xff] %v868_v59  ;;  %v747_v59 = vmul.f32 1.442695, %v716_v62  ;;  %791 = vadd.xlane.f32.xlu1 %v2010_v13 }
 0x194   : > { %1008 = vst [vmem:[#allocation1 + $0x7] ss:$9 sm:$0xff] %v869_v15 }
 0x195   : > { %2011 = vpow2.f32 %v747_v59 }
 0x196   : > { %2013 = vpow2.f32 %v733_v55 }
 0x197   : > { %2015 = vpow2.f32 %v719_v14 }
 0x198   : > { %2017 = vpow2.f32 %v739_v39 }
 0x199   : > { %2019 = vpow2.f32 %v725_v12 }
 0x19a   : > { %2021 = vpow2.f32 %v745_v50 }
 0x19b   : > { %v2426_v38 = vld [vmem:[#allocation1] sm:$0xff]  ;;  %v2012_v15 = vpop.eup %2011  ;;  %2023 = vpow2.f32 %v731_v58 }
 0x19c   : > { %1010 = vst [vmem:[#allocation1] ss:$9 sm:$0xff] %v870_v25  ;;  %v2014_v2 = vpop.eup %2013  ;;  %811 = vadd.xlane.f32.xlu2 %v2012_v15  ;;  %v893_v25 = vperm.slane %v2408_v1, 7  ;;  %2025 = vpow2.f32 %v737_v33 }
 0x19d   : > { %1011 = vst [vmem:[#allocation1 + $0x1] ss:$9 sm:$0xff] %v871_v34  ;;  %797 = vadd.xlane.f32.xlu1 %v2014_v2  ;;  %v2016_v10 = vpop.eup %2015  ;;  %2027 = vpow2.f32 %v743_v60 }
 0x19e   : > { %1012 = vst [vmem:[#allocation1 + $0x2] ss:$9 sm:$0xff] %v872_v36  ;;  %783 = vadd.xlane.f32.xlu0 %v2016_v10  ;;  %v2018_v54 = vpop.eup %2017 }
 0x19f   : > { %1013 = vst [vmem:[#allocation1 + $0x3] ss:$9 sm:$0xff] %v873_v11  ;;  %v2020_v47 = vpop.eup %2019 }
 0x1a0   : > { %1014 = vst [vmem:[#allocation1 + $0x4] ss:$9 sm:$0xff] %v874_v40  ;;  %v2022_v30 = vpop.eup %2021 }
 0x1a1   : > { %1015 = vst [vmem:[#allocation1 + $0x5] ss:$9 sm:$0xff] %v875_v56  ;;  %v2024_v21 = vpop.eup %2023 }
 0x1a2   : > { %1016 = vst [vmem:[#allocation1 + $0x6] ss:$9 sm:$0xff] %v876_v26  ;;  %v2026_v34 = vpop.eup %2025 }
 0x1a3   : > { %1017 = vst [vmem:[#allocation1 + $0x7] ss:$9 sm:$0xff] %v877_v63 }
 0x1a5   : > { %803 = vadd.xlane.f32.xlu1 %v2018_v54  ;;  %v766_v52 = vpop.xlane.xlu0 %765 }
 0x1a6   : > { %789 = vadd.xlane.f32.xlu0 %v2020_v47  ;;  %v894_v17 = vperm.slane %v766_v52, 0  ;;  %v895_v31 = vperm.slane %v766_v52, 1  ;;  %v896_v1 = vperm.slane %v766_v52, 2  ;;  %v897_v41 = vperm.slane %v766_v52, 3 }
 0x1a7   : > { %v898_v42 = vperm.slane %v766_v52, 4  ;;  %v899_v3 = vperm.slane %v766_v52, 5  ;;  %v900_v44 = vperm.slane %v766_v52, 6  ;;  %v901_v4 = vperm.slane %v766_v52, 7 }
 0x1a9   : > { %v768_v11 = vpop.xlane.xlu1 %767 }
 0x1aa   : > { %v2450_v45 = vld [vmem:[#allocation1] sm:$0xff]  ;;  %v902_v40 = vperm.slane %v768_v11, 0  ;;  %v903_v51 = vperm.slane %v768_v11, 1  ;;  %v904_v56 = vperm.slane %v768_v11, 2  ;;  %v905_v26 = vperm.slane %v768_v11, 3 }
 0x1ab   : > { %1019 = vst [vmem:[#allocation1] ss:$9 sm:$0xff] %v878_v37  ;;  %v906_v62 = vperm.slane %v768_v11, 4  ;;  %v908_v63 = vperm.slane %v768_v11, 6  ;;  %v909_v49 = vperm.slane %v768_v11, 7 }
 0x1ac   : > { %1020 = vst [vmem:[#allocation1 + $0x1] ss:$9 sm:$0xff] %v879_v43 }
 0x1ad   : > { %1021 = vst [vmem:[#allocation1 + $0x2] ss:$9 sm:$0xff] %v880_v16  ;;  %809 = vadd.xlane.f32.xlu1 %v2022_v30  ;;  %v772_v16 = vpop.xlane.xlu0 %771 }
 0x1ae   : > { %1022 = vst [vmem:[#allocation1 + $0x3] ss:$9 sm:$0xff] %v881_v5  ;;  %795 = vadd.xlane.f32.xlu0 %v2024_v21  ;;  %v918_v2 = vperm.slane %v772_v16, 0  ;;  %v920_v12 = vperm.slane %v772_v16, 2  ;;  %v923_v8 = vperm.slane %v772_v16, 5  ;;  %v924_v10 = vperm.slane %v772_v16, 6 }
 0x1af   : > { %1023 = vst [vmem:[#allocation1 + $0x4] ss:$9 sm:$0xff] %v882_v0  ;;  %v921_v0 = vperm.slane %v772_v16, 3 }
 0x1b0   : > { %1024 = vst [vmem:[#allocation1 + $0x5] ss:$9 sm:$0xff] %v883_v7  ;;  %v922_v7 = vperm.slane %v772_v16, 4 }
 0x1b1   : > { %1025 = vst [vmem:[#allocation1 + $0x6] ss:$9 sm:$0xff] %v884_v18 }
 0x1b2   : > { %1026 = vst [vmem:[#allocation1 + $0x7] ss:$9 sm:$0xff] %v885_v20 }
 0x1b4   : > { %1110 = vperm.xlu2 %1992, %v2382_v46   ;;  %v2028_v46 = vpop.eup %2027 }
 0x1b6   : > { %801 = vadd.xlane.f32.xlu0 %v2026_v34 }
 0x1b7   : > { %v770_v55 = vpop.xlane.xlu2 %769 }
 0x1b8   : > { %v911_v59 = vperm.slane %v770_v55, 1  ;;  %v912_v13 = vperm.slane %v770_v55, 2  ;;  %v913_v37 = vperm.slane %v770_v55, 3  ;;  %v914_v39 = vperm.slane %v770_v55, 4 }
 0x1b9   : > { %v2468_v22 = vld [vmem:[#allocation1] sm:$0xff]  ;;  %v915_v43 = vperm.slane %v770_v55, 5  ;;  %v917_v15 = vperm.slane %v770_v55, 7 }
 0x1ba   : > { %1028 = vst [vmem:[#allocation1] ss:$9 sm:$0xff] %v886_v53 }
 0x1bb   : > { %1029 = vst [vmem:[#allocation1 + $0x1] ss:$9 sm:$0xff] %v887_v24 }
 0x1bc   : > { %1030 = vst [vmem:[#allocation1 + $0x2] ss:$9 sm:$0xff] %v888_v27  ;;  %1116 = vperm.xlu2 %1992, %v2388_v28   ;;  %v907_v28 = vperm.slane %v768_v11, 5 }
 0x1bd   : > { %1031 = vst [vmem:[#allocation1 + $0x3] ss:$9 sm:$0xff] %v889_v29 }
 0x1be   : > { %1032 = vst [vmem:[#allocation1 + $0x4] ss:$9 sm:$0xff] %v890_v32  ;;  %807 = vadd.xlane.f32.xlu0 %v2028_v46 }
 0x1bf   : > { %1033 = vst [vmem:[#allocation1 + $0x5] ss:$9 sm:$0xff] %v891_v35  ;;  %v2492_v53 = vpop.xlane.xlu2 %787 }
 0x1c0   : > { %1034 = vst [vmem:[#allocation1 + $0x6] ss:$9 sm:$0xff] %v892_v19 }
 0x1c1   : > { %1035 = vst [vmem:[#allocation1 + $0x7] ss:$9 sm:$0xff] %v893_v25 }
 0x1c4   : > { %1125 = vperm.xlu2 %1992, %v2450_v45   ;;  %v916_v45 = vperm.slane %v770_v55, 6 }
 0x1c6   : > { %1119 = vperm.xlu1 %1994, %v2403_v61   ;;  %v910_v61 = vperm.slane %v770_v55, 0 }
 0x1c7   : > { %v2494_v32 = vpop.xlane.xlu2 %793 }
 0x1c8   : > { %v1036_v36 = vld [vmem:[#allocation1] sm:$0xff] }
 0x1c9   : > { %1037 = vst [vmem:[#allocation1] ss:$9 sm:$0xff] %v894_v17 }
 0x1ca   : > { %1038 = vst [vmem:[#allocation1 + $0x1] ss:$9 sm:$0xff] %v895_v31 }
 0x1cb   : > { %1039 = vst [vmem:[#allocation1 + $0x2] ss:$9 sm:$0xff] %v896_v1 }
 0x1cc   : > { %1040 = vst [vmem:[#allocation1 + $0x3] ss:$9 sm:$0xff] %v897_v41 }
 0x1cd   : > { %1041 = vst [vmem:[#allocation1 + $0x4] ss:$9 sm:$0xff] %v898_v42 }
 0x1ce   : > { %1042 = vst [vmem:[#allocation1 + $0x5] ss:$9 sm:$0xff] %v899_v3  ;;  %1131 = vperm.xlu1 %1994, %v1036_v36  }
 0x1cf   : > { %1043 = vst [vmem:[#allocation1 + $0x6] ss:$9 sm:$0xff] %v900_v44  ;;  %v2498_v17 = vpop.xlane.xlu2 %799 }
 0x1d0   : > { %1044 = vst [vmem:[#allocation1 + $0x7] ss:$9 sm:$0xff] %v901_v4 }
 0x1d2   : > { %1113 = vperm.xlu0 %1993, %v2384_v9   ;;  %v919_v9 = vperm.slane %v772_v16, 1 }
 0x1d7   : > { %v1045_v48 = vld [vmem:[#allocation1] sm:$0xff] }
 0x1d8   : > { %1046 = vst [vmem:[#allocation1] ss:$9 sm:$0xff] %v902_v40  ;;  %1134 = vperm.xlu2 %1992, %v1045_v48  }
 0x1d9   : > { %1047 = vst [vmem:[#allocation1 + $0x1] ss:$9 sm:$0xff] %v903_v51 }
 0x1da   : > { %1048 = vst [vmem:[#allocation1 + $0x2] ss:$9 sm:$0xff] %v904_v56  ;;  %1122 = vperm.xlu0 %1993, %v2426_v38   ;;  %v925_v38 = vperm.slane %v772_v16, 7 }
 0x1db   : > { %1049 = vst [vmem:[#allocation1 + $0x3] ss:$9 sm:$0xff] %v905_v26 }
 0x1dc   : > { %1050 = vst [vmem:[#allocation1 + $0x4] ss:$9 sm:$0xff] %v906_v62  ;;  %v2509_v62 = vand.u32 127, %v554_v6 }
 0x1dd   : > { %1051 = vst [vmem:[#allocation1 + $0x5] ss:$9 sm:$0xff] %v907_v28 }
 0x1de   : > { %1052 = vst [vmem:[#allocation1 + $0x6] ss:$9 sm:$0xff] %v908_v63 }
 0x1df   : > { %1053 = vst [vmem:[#allocation1 + $0x7] ss:$9 sm:$0xff] %v909_v49 }
 0x1e2   : > { %1128 = vperm.xlu0 %1993, %v2468_v22  }
 0x1e6   : > { %v1054_v14 = vld [vmem:[#allocation1] sm:$0xff] }
 0x1e7   : > { %1055 = vst [vmem:[#allocation1] ss:$9 sm:$0xff] %v910_v61 }
 0x1e8   : > { %1056 = vst [vmem:[#allocation1 + $0x1] ss:$9 sm:$0xff] %v911_v59  ;;  %v778_v31 = vpop.xlane.xlu1 %777 }
 0x1e9   : > { %1057 = vst [vmem:[#allocation1 + $0x2] ss:$9 sm:$0xff] %v912_v13  ;;  %v942_v34 = vperm.slane %v778_v31, 0  ;;  %v943_v36 = vperm.slane %v778_v31, 1  ;;  %v944_v42 = vperm.slane %v778_v31, 2  ;;  %v945_v3 = vperm.slane %v778_v31, 3 }
 0x1ea   : > { %1058 = vst [vmem:[#allocation1 + $0x3] ss:$9 sm:$0xff] %v913_v37  ;;  %1137 = vperm.xlu0 %1993, %v1054_v14   ;;  %v946_v44 = vperm.slane %v778_v31, 4  ;;  %v947_v4 = vperm.slane %v778_v31, 5  ;;  %v948_v46 = vperm.slane %v778_v31, 6  ;;  %v949_v11 = vperm.slane %v778_v31, 7 }
 0x1eb   : > { %1059 = vst [vmem:[#allocation1 + $0x4] ss:$9 sm:$0xff] %v914_v39  ;;  %v1265_v31 = vperm.slane %v2492_v53, 1 }
 0x1ec   : > { %1060 = vst [vmem:[#allocation1 + $0x5] ss:$9 sm:$0xff] %v915_v43 }
 0x1ed   : > { %1061 = vst [vmem:[#allocation1 + $0x6] ss:$9 sm:$0xff] %v916_v45 }
 0x1ee   : > { %1062 = vst [vmem:[#allocation1 + $0x7] ss:$9 sm:$0xff] %v917_v15 }
 0x1f0   : > { %v782_v6 = vpop.xlane.xlu1 %781 }
 0x1f1   : > { %v1240_v37 = vperm.slane %v782_v6, 0  ;;  %v1241_v39 = vperm.slane %v782_v6, 1  ;;  %v1242_v45 = vperm.slane %v782_v6, 2  ;;  %v1243_v15 = vperm.slane %v782_v6, 3 }
 0x1f2   : > { %v1244_v16 = vperm.slane %v782_v6, 4 }
 0x1f5   : > { %v2488_v5 = vld [vmem:[#allocation1] sm:$0xff]  ;;  %v774_v18 = vpop.xlane.xlu0 %773 }
 0x1f6   : > { %1064 = vst [vmem:[#allocation1] ss:$9 sm:$0xff] %v918_v2  ;;  %v926_v20 = vperm.slane %v774_v18, 0  ;;  %v927_v50 = vperm.slane %v774_v18, 1  ;;  %v928_v54 = vperm.slane %v774_v18, 2  ;;  %v929_v47 = vperm.slane %v774_v18, 3 }
 0x1f7   : > { %1065 = vst [vmem:[#allocation1 + $0x1] ss:$9 sm:$0xff] %v919_v9  ;;  %v930_v24 = vperm.slane %v774_v18, 4  ;;  %v931_v22 = vperm.slane %v774_v18, 5  ;;  %v932_v27 = vperm.slane %v774_v18, 6  ;;  %v933_v29 = vperm.slane %v774_v18, 7 }
 0x1f8   : > { %1066 = vst [vmem:[#allocation1 + $0x2] ss:$9 sm:$0xff] %v920_v12  ;;  %v1245_v2 = vperm.slane %v782_v6, 5  ;;  %v1246_v9 = vperm.slane %v782_v6, 6  ;;  %v1247_v12 = vperm.slane %v782_v6, 7 }
 0x1f9   : > { %1067 = vst [vmem:[#allocation1 + $0x3] ss:$9 sm:$0xff] %v921_v0 }
 0x1fa   : > { %1068 = vst [vmem:[#allocation1 + $0x4] ss:$9 sm:$0xff] %v922_v7 }
 0x1fb   : > { %1069 = vst [vmem:[#allocation1 + $0x5] ss:$9 sm:$0xff] %v923_v8 }
 0x1fc   : > { %1070 = vst [vmem:[#allocation1 + $0x6] ss:$9 sm:$0xff] %v924_v10 }
 0x1fd   : > { %1071 = vst [vmem:[#allocation1 + $0x7] ss:$9 sm:$0xff] %v925_v38  ;;  %v776_v30 = vpop.xlane.xlu0 %775 }
 0x1fe   : > { %v934_v33 = vperm.slane %v776_v30, 0  ;;  %v935_v35 = vperm.slane %v776_v30, 1  ;;  %v936_v19 = vperm.slane %v776_v30, 2  ;;  %v937_v25 = vperm.slane %v776_v30, 3 }
 0x1ff   : > { %v938_v23 = vperm.slane %v776_v30, 4  ;;  %v939_v52 = vperm.slane %v776_v30, 5  ;;  %v940_v57 = vperm.slane %v776_v30, 6  ;;  %v941_v60 = vperm.slane %v776_v30, 7 }
 0x204   : > { %v2490_v58 = vld [vmem:[#allocation1] sm:$0xff] }
 0x205   : > { %1073 = vst [vmem:[#allocation1] ss:$9 sm:$0xff] %v926_v20  ;;  %v2500_v1 = vpop.xlane.xlu2 %805  ;;  %v780_v48 = vpop.xlane.xlu0 %779 }
 0x206   : > { %1074 = vst [vmem:[#allocation1 + $0x1] ss:$9 sm:$0xff] %v927_v50  ;;  %v950_v51 = vperm.slane %v780_v48, 0  ;;  %v951_v26 = vperm.slane %v780_v48, 1  ;;  %v952_v28 = vperm.slane %v780_v48, 2  ;;  %v953_v63 = vperm.slane %v780_v48, 3 }
 0x207   : > { %1075 = vst [vmem:[#allocation1 + $0x2] ss:$9 sm:$0xff] %v928_v54  ;;  %v954_v49 = vperm.slane %v780_v48, 4  ;;  %v955_v55 = vperm.slane %v780_v48, 5  ;;  %v956_v59 = vperm.slane %v780_v48, 6  ;;  %v957_v14 = vperm.slane %v780_v48, 7 }
 0x208   : > { %1076 = vst [vmem:[#allocation1 + $0x3] ss:$9 sm:$0xff] %v929_v47 }
 0x209   : > { %1077 = vst [vmem:[#allocation1 + $0x4] ss:$9 sm:$0xff] %v930_v24  ;;  %v786_v24 = vpop.xlane.xlu1 %785 }
 0x20a   : > { %1078 = vst [vmem:[#allocation1 + $0x5] ss:$9 sm:$0xff] %v931_v22  ;;  %v1256_v22 = vperm.slane %v786_v24, 0  ;;  %v1258_v30 = vperm.slane %v786_v24, 2 }
 0x20b   : > { %1079 = vst [vmem:[#allocation1 + $0x6] ss:$9 sm:$0xff] %v932_v27  ;;  %v1257_v27 = vperm.slane %v786_v24, 1 }
 0x20c   : > { %1080 = vst [vmem:[#allocation1 + $0x7] ss:$9 sm:$0xff] %v933_v29 }
 0x20f   : > { %v2504_v40 = vpop.xlane.xlu2 %811 }
 0x211   : > { %v784_v0 = vpop.xlane.xlu0 %783 }
 0x212   : > { %v1248_v7 = vperm.slane %v784_v0, 0  ;;  %v1249_v10 = vperm.slane %v784_v0, 1  ;;  %v1250_v38 = vperm.slane %v784_v0, 2  ;;  %v1251_v18 = vperm.slane %v784_v0, 3 }
 0x213   : > { %v2496_v21 = vld [vmem:[#allocation1] sm:$0xff]  ;;  %v1252_v20 = vperm.slane %v784_v0, 4  ;;  %v1253_v50 = vperm.slane %v784_v0, 5  ;;  %v1254_v54 = vperm.slane %v784_v0, 6  ;;  %v1255_v47 = vperm.slane %v784_v0, 7 }
 0x214   : > { %1082 = vst [vmem:[#allocation1] ss:$9 sm:$0xff] %v934_v33  ;;  %v1259_v33 = vperm.slane %v786_v24, 3 }
 0x215   : > { %1083 = vst [vmem:[#allocation1 + $0x1] ss:$9 sm:$0xff] %v935_v35  ;;  %v1260_v35 = vperm.slane %v786_v24, 4 }
 0x216   : > { %1084 = vst [vmem:[#allocation1 + $0x2] ss:$9 sm:$0xff] %v936_v19  ;;  %v1261_v19 = vperm.slane %v786_v24, 5 }
 0x217   : > { %1085 = vst [vmem:[#allocation1 + $0x3] ss:$9 sm:$0xff] %v937_v25  ;;  %v2511_v61 = vpop.permute.xlu2 %1110  ;;  %v2517_v25 = vpop.xlane.xlu1 %791 }
 0x218   : > { %1086 = vst [vmem:[#allocation1 + $0x4] ss:$9 sm:$0xff] %v938_v23  ;;  %v1159_v13 = vperm.slane %v2511_v61, %v2509_v62  ;;  %v1262_v23 = vperm.slane %v786_v24, 6  ;;  %v1282_v0 = vperm.slane %v2517_v25, 2 }
 0x219   : > { %1087 = vst [vmem:[#allocation1 + $0x5] ss:$9 sm:$0xff] %v939_v52  ;;  %v1263_v52 = vperm.slane %v786_v24, 7 }
 0x21a   : > { %1088 = vst [vmem:[#allocation1 + $0x6] ss:$9 sm:$0xff] %v940_v57  ;;  %v1264_v57 = vperm.slane %v2492_v53, 0 }
 0x21b   : > { %1089 = vst [vmem:[#allocation1 + $0x7] ss:$9 sm:$0xff] %v941_v60 }
 0x21f   : > { %v2520_v60 = vpop.xlane.xlu1 %797  ;;  %v1117_v24 = vpop.permute.xlu2 %1116 }
 0x222   : > { %v2502_v41 = vld [vmem:[#allocation1] sm:$0xff] }
 0x223   : > { %1091 = vst [vmem:[#allocation1] ss:$9 sm:$0xff] %v942_v34 }
 0x224   : > { %1092 = vst [vmem:[#allocation1 + $0x1] ss:$9 sm:$0xff] %v943_v36  ;;  %v1266_v36 = vperm.slane %v2492_v53, 2 }
 0x225   : > { %1093 = vst [vmem:[#allocation1 + $0x2] ss:$9 sm:$0xff] %v944_v42  ;;  %v1267_v42 = vperm.slane %v2492_v53, 3 }
 0x226   : > { %1094 = vst [vmem:[#allocation1 + $0x3] ss:$9 sm:$0xff] %v945_v3  ;;  %v1268_v3 = vperm.slane %v2492_v53, 4 }
 0x227   : > { %1095 = vst [vmem:[#allocation1 + $0x4] ss:$9 sm:$0xff] %v946_v44  ;;  %v790_v44 = vpop.xlane.xlu0 %789  ;;  %v2529_v48 = vpop.xlane.xlu1 %803 }
 0x228   : > { %1096 = vst [vmem:[#allocation1 + $0x5] ss:$9 sm:$0xff] %v947_v4  ;;  %v1269_v4 = vperm.slane %v2492_v53, 5  ;;  %v1278_v6 = vperm.slane %v790_v44, 6  ;;  %v1126_v61 = vpop.permute.xlu2 %1125 }
 0x229   : > { %1097 = vst [vmem:[#allocation1 + $0x6] ss:$9 sm:$0xff] %v948_v46  ;;  %v1270_v46 = vperm.slane %v2492_v53, 6 }
 0x22a   : > { %1098 = vst [vmem:[#allocation1 + $0x7] ss:$9 sm:$0xff] %v949_v11  ;;  %v1271_v11 = vperm.slane %v2492_v53, 7 }
 0x22f   : > { %v2533_v53 = vpop.xlane.xlu1 %809 }
 0x231   : > { %v2506_v56 = vld [vmem:[#allocation1] sm:$0xff] }
 0x232   : > { %1100 = vst [vmem:[#allocation1] ss:$9 sm:$0xff] %v950_v51  ;;  %v2531_v51 = vpop.xlane.xlu0 %795 }
 0x233   : > { %1101 = vst [vmem:[#allocation1 + $0x1] ss:$9 sm:$0xff] %v951_v26  ;;  %v1272_v26 = vperm.slane %v790_v44, 0 }
 0x234   : > { %1102 = vst [vmem:[#allocation1 + $0x2] ss:$9 sm:$0xff] %v952_v28  ;;  %v1273_v28 = vperm.slane %v790_v44, 1 }
 0x235   : > { %1103 = vst [vmem:[#allocation1 + $0x3] ss:$9 sm:$0xff] %v953_v63 }
 0x236   : > { %1104 = vst [vmem:[#allocation1 + $0x4] ss:$9 sm:$0xff] %v954_v49  ;;  %v1274_v49 = vperm.slane %v790_v44, 2 }
 0x237   : > { %1105 = vst [vmem:[#allocation1 + $0x5] ss:$9 sm:$0xff] %v955_v55  ;;  %v1275_v55 = vperm.slane %v790_v44, 3 }
 0x238   : > { %1106 = vst [vmem:[#allocation1 + $0x6] ss:$9 sm:$0xff] %v956_v59  ;;  %v1276_v59 = vperm.slane %v790_v44, 4 }
 0x239   : > { %1107 = vst [vmem:[#allocation1 + $0x7] ss:$9 sm:$0xff] %v957_v14  ;;  %v1277_v14 = vperm.slane %v790_v44, 5 }
 0x240   : > { %v2515_v43 = vld [vmem:[#allocation1] sm:$0xff] }
 0x241   : > { %1368 = vst [vmem:[#allocation1] ss:$9 sm:$0xff] %v1240_v37  ;;  %v1279_v37 = vperm.slane %v790_v44, 7 }
 0x242   : > { %1370 = vst [vmem:[#allocation1 + $0x1] ss:$9 sm:$0xff] %v1241_v39  ;;  %v2535_v39 = vpop.xlane.xlu0 %801 }
 0x243   : > { %1372 = vst [vmem:[#allocation1 + $0x2] ss:$9 sm:$0xff] %v1242_v45  ;;  %v2538_v45 = vadd.s32 4294967272, %v2509_v62 }
 0x244   : > { %1374 = vst [vmem:[#allocation1 + $0x3] ss:$9 sm:$0xff] %v1243_v15  ;;  %v1120_v15 = vpop.permute.xlu1 %1119 }
 0x245   : > { %1376 = vst [vmem:[#allocation1 + $0x4] ss:$9 sm:$0xff] %v1244_v16  ;;  %v1169_v16 = vperm.slane %v1120_v15, %v2538_v45 }
 0x246   : > { %1378 = vst [vmem:[#allocation1 + $0x5] ss:$9 sm:$0xff] %v1245_v2  ;;  %v1280_v2 = vperm.slane %v2517_v25, 0 }
 0x247   : > { %1380 = vst [vmem:[#allocation1 + $0x6] ss:$9 sm:$0xff] %v1246_v9  ;;  %v1281_v9 = vperm.slane %v2517_v25, 1 }
 0x248   : > { %1382 = vst [vmem:[#allocation1 + $0x7] ss:$9 sm:$0xff] %v1247_v12 }
 0x24f   : > { %v1383_v8 = vld [vmem:[#allocation1] sm:$0xff] }
 0x250   : > { %1384 = vst [vmem:[#allocation1] ss:$9 sm:$0xff] %v1248_v7  ;;  %1520 = vperm.xlu0 %1993, %v1383_v8   ;;  %v1283_v7 = vperm.slane %v2517_v25, 3  ;;  %v1284_v8 = vperm.slane %v2517_v25, 4 }
 0x251   : > { %1385 = vst [vmem:[#allocation1 + $0x1] ss:$9 sm:$0xff] %v1249_v10  ;;  %v2546_v10 = vpop.xlane.xlu0 %807 }
 0x252   : > { %1386 = vst [vmem:[#allocation1 + $0x2] ss:$9 sm:$0xff] %v1250_v38  ;;  %v1285_v38 = vperm.slane %v2517_v25, 5 }
 0x253   : > { %1387 = vst [vmem:[#allocation1 + $0x3] ss:$9 sm:$0xff] %v1251_v18  ;;  %v2550_v18 = vadd.s32 4294967240, %v2509_v62 }
 0x254   : > { %1388 = vst [vmem:[#allocation1 + $0x4] ss:$9 sm:$0xff] %v1252_v20  ;;  %v1286_v20 = vperm.slane %v2517_v25, 6 }
 0x255   : > { %1389 = vst [vmem:[#allocation1 + $0x5] ss:$9 sm:$0xff] %v1253_v50  ;;  %v1132_v50 = vpop.permute.xlu1 %1131 }
 0x256   : > { %1390 = vst [vmem:[#allocation1 + $0x6] ss:$9 sm:$0xff] %v1254_v54  ;;  %v1287_v54 = vperm.slane %v2517_v25, 7  ;;  %v1289_v25 = vperm.slane %v2494_v32, 1 }
 0x257   : > { %1391 = vst [vmem:[#allocation1 + $0x7] ss:$9 sm:$0xff] %v1255_v47  ;;  %v1185_v47 = vperm.slane %v1132_v50, %v2550_v18  ;;  %v1302_v50 = vperm.slane %v2531_v51, 6 }
 0x25e   : > { %v1392_v29 = vld [vmem:[#allocation1] sm:$0xff] }
 0x25f   : > { %1393 = vst [vmem:[#allocation1] ss:$9 sm:$0xff] %v1256_v22  ;;  %1523 = vperm.xlu1 %1994, %v1392_v29   ;;  %v2556_v22 = vadd.s32 4294967280, %v2509_v62  ;;  %v1114_v29 = vpop.permute.xlu0 %1113 }
 0x260   : > { %1394 = vst [vmem:[#allocation1 + $0x1] ss:$9 sm:$0xff] %v1257_v27  ;;  %v2559_v27 = vadd.s32 4294967288, %v2509_v62 }
 0x261   : > { %1395 = vst [vmem:[#allocation1 + $0x2] ss:$9 sm:$0xff] %v1258_v30 }
 0x262   : > { %1396 = vst [vmem:[#allocation1 + $0x3] ss:$9 sm:$0xff] %v1259_v33  ;;  %v1161_v30 = vperm.slane %v1114_v29, %v2559_v27  ;;  %v1165_v33 = vperm.slane %v1117_v24, %v2556_v22 }
 0x263   : > { %1397 = vst [vmem:[#allocation1 + $0x4] ss:$9 sm:$0xff] %v1260_v35  ;;  %v1288_v35 = vperm.slane %v2494_v32, 0 }
 0x264   : > { %1398 = vst [vmem:[#allocation1 + $0x5] ss:$9 sm:$0xff] %v1261_v19  ;;  %v1163_v19 = vsel %vm1162_vm1, %v1161_v30, %v1159_v13  ;;  %v1292_v13 = vperm.slane %v2494_v32, 4  ;;  %v1304_v30 = vperm.slane %v2520_v60, 0 }
 0x265   : > { %1399 = vst [vmem:[#allocation1 + $0x6] ss:$9 sm:$0xff] %v1262_v23 }
 0x266   : > { %1400 = vst [vmem:[#allocation1 + $0x7] ss:$9 sm:$0xff] %v1263_v52  ;;  %v1167_v52 = vsel %vm1166_vm2, %v1165_v33, %v1163_v19  ;;  %v1305_v33 = vperm.slane %v2520_v60, 1  ;;  %v1306_v19 = vperm.slane %v2520_v60, 2 }
 0x267   : > { %v1123_v44 = vpop.permute.xlu0 %1122 }
 0x26d   : > { %v1401_v34 = vld [vmem:[#allocation1] sm:$0xff] }
 0x26e   : > { %1402 = vst [vmem:[#allocation1] ss:$9 sm:$0xff] %v1264_v57  ;;  %1526 = vperm.xlu2 %1992, %v1401_v34   ;;  %v1290_v57 = vperm.slane %v2494_v32, 2  ;;  %v1291_v34 = vperm.slane %v2494_v32, 3 }
 0x26f   : > { %1403 = vst [vmem:[#allocation1 + $0x1] ss:$9 sm:$0xff] %v1265_v31  ;;  %v1171_v31 = vsel %vm1170_vm3, %v1169_v16, %v1167_v52  ;;  %v1310_v52 = vperm.slane %v2520_v60, 6 }
 0x270   : > { %1404 = vst [vmem:[#allocation1 + $0x2] ss:$9 sm:$0xff] %v1266_v36  ;;  %v2574_v36 = vadd.s32 4294967256, %v2509_v62 }
 0x271   : > { %1405 = vst [vmem:[#allocation1 + $0x3] ss:$9 sm:$0xff] %v1267_v42  ;;  %v2578_v42 = vadd.s32 4294967264, %v2509_v62 }
 0x272   : > { %1406 = vst [vmem:[#allocation1 + $0x4] ss:$9 sm:$0xff] %v1268_v3  ;;  %v1293_v3 = vperm.slane %v2494_v32, 5 }
 0x273   : > { %1407 = vst [vmem:[#allocation1 + $0x5] ss:$9 sm:$0xff] %v1269_v4  ;;  %v1294_v4 = vperm.slane %v2494_v32, 6 }
 0x274   : > { %1408 = vst [vmem:[#allocation1 + $0x6] ss:$9 sm:$0xff] %v1270_v46  ;;  %v1173_v46 = vperm.slane %v1123_v44, %v2578_v42  ;;  %v1316_v44 = vperm.slane %v2498_v17, 4 }
 0x275   : > { %1409 = vst [vmem:[#allocation1 + $0x7] ss:$9 sm:$0xff] %v1271_v11  ;;  %v1295_v11 = vperm.slane %v2494_v32, 7 }
 0x27c   : > { %v1410_v63 = vld [vmem:[#allocation1] sm:$0xff] }
 0x27d   : > { %1411 = vst [vmem:[#allocation1] ss:$9 sm:$0xff] %v1272_v26  ;;  %1529 = vperm.xlu1 %1994, %v1410_v63   ;;  %v1177_v26 = vperm.slane %v1126_v61, %v2574_v36 }
 0x27e   : > { %1412 = vst [vmem:[#allocation1 + $0x1] ss:$9 sm:$0xff] %v1273_v28  ;;  %v1175_v28 = vsel %vm1174_vm4, %v1173_v46, %v1171_v31  ;;  %v1312_v31 = vperm.slane %v2498_v17, 0  ;;  %v1319_v46 = vperm.slane %v2498_v17, 7 }
 0x27f   : > { %1413 = vst [vmem:[#allocation1 + $0x2] ss:$9 sm:$0xff] %v1274_v49  ;;  %v1179_v63 = vsel %vm1178_vm5, %v1177_v26, %v1175_v28  ;;  %v2588_v49 = vadd.s32 4294967232, %v2509_v62  ;;  %v1321_v28 = vperm.slane %v2535_v39, 1 }
 0x280   : > { %1414 = vst [vmem:[#allocation1 + $0x3] ss:$9 sm:$0xff] %v1275_v55  ;;  %v2591_v55 = vadd.s32 4294967248, %v2509_v62 }
 0x281   : > { %1415 = vst [vmem:[#allocation1 + $0x4] ss:$9 sm:$0xff] %v1276_v59  ;;  %v1135_v59 = vpop.permute.xlu2 %1134 }
 0x282   : > { %1416 = vst [vmem:[#allocation1 + $0x5] ss:$9 sm:$0xff] %v1277_v14  ;;  %v1129_v14 = vpop.permute.xlu0 %1128  ;;  %v1189_v16 = vperm.slane %v1135_v59, %v2588_v49  ;;  %v1323_v59 = vperm.slane %v2535_v39, 3 }
 0x283   : > { %1417 = vst [vmem:[#allocation1 + $0x6] ss:$9 sm:$0xff] %v1278_v6  ;;  %v1181_v32 = vperm.slane %v1129_v14, %v2591_v55  ;;  %v1296_v6 = vperm.slane %v2531_v51, 0  ;;  %v1324_v14 = vperm.slane %v2535_v39, 4 }
 0x284   : > { %1418 = vst [vmem:[#allocation1 + $0x7] ss:$9 sm:$0xff] %v1279_v37  ;;  %v1297_v37 = vperm.slane %v2531_v51, 1 }
 0x28b   : > { %v1419_v12 = vld [vmem:[#allocation1] sm:$0xff] }
 0x28c   : > { %1420 = vst [vmem:[#allocation1] ss:$9 sm:$0xff] %v1280_v2  ;;  %1532 = vperm.xlu2 %1992, %v1419_v12   ;;  %v1183_v2 = vsel %vm1182_vm6, %v1181_v32, %v1179_v63  ;;  %v1322_v63 = vperm.slane %v2535_v39, 2  ;;  %v1326_v32 = vperm.slane %v2535_v39, 6 }
 0x28d   : > { %1421 = vst [vmem:[#allocation1 + $0x1] ss:$9 sm:$0xff] %v1281_v9  ;;  %v1298_v9 = vperm.slane %v2531_v51, 2  ;;  %v1187_v12 = vsel %vm1186_vm7, %v1185_v47, %v1183_v2  ;;  %v1303_v47 = vperm.slane %v2531_v51, 7  ;;  %v1330_v2 = vperm.slane %v2529_v48, 2 }
 0x28e   : > { %1422 = vst [vmem:[#allocation1 + $0x2] ss:$9 sm:$0xff] %v1282_v0  ;;  %v1299_v0 = vperm.slane %v2531_v51, 3 }
 0x28f   : > { %1423 = vst [vmem:[#allocation1 + $0x3] ss:$9 sm:$0xff] %v1283_v7  ;;  %v1191_v7 = vsel %vm1190_vm8, %v1189_v16, %v1187_v12  ;;  %v1332_v12 = vperm.slane %v2529_v48, 4 }
 0x290   : > { %1424 = vst [vmem:[#allocation1 + $0x4] ss:$9 sm:$0xff] %v1284_v8  ;;  %v1300_v8 = vperm.slane %v2531_v51, 4 }
 0x291   : > { %1425 = vst [vmem:[#allocation1 + $0x5] ss:$9 sm:$0xff] %v1285_v38  ;;  %v1301_v38 = vperm.slane %v2531_v51, 5  ;;  %v1307_v51 = vperm.slane %v2520_v60, 3 }
 0x292   : > { %1426 = vst [vmem:[#allocation1 + $0x6] ss:$9 sm:$0xff] %v1286_v20  ;;  %v2605_v20 = vadd.s32 4294967224, %v2509_v62 }
 0x293   : > { %1427 = vst [vmem:[#allocation1 + $0x7] ss:$9 sm:$0xff] %v1287_v54  ;;  %v1138_v54 = vpop.permute.xlu0 %1137 }
 0x294   : > { %v1193_v24 = vperm.slane %v1138_v54, %v2605_v20  ;;  %v1338_v54 = vperm.slane %v2500_v1, 2 }
 0x296   : > { %v2611_v29 = vsel %vm1194_vm9, %v1193_v24, %v1191_v7  ;;  %v1335_v7 = vperm.slane %v2529_v48, 7  ;;  %v1340_v24 = vperm.slane %v2500_v1, 4 }
 0x29a   : > { %v1428_v23 = vld [vmem:[#allocation1] sm:$0xff] }
 0x29b   : > { %1429 = vst [vmem:[#allocation1] ss:$9 sm:$0xff] %v1288_v35  ;;  %1535 = vperm.xlu1 %1994, %v1428_v23   ;;  %v1309_v23 = vperm.slane %v2520_v60, 5 }
 0x29c   : > { %1430 = vst [vmem:[#allocation1 + $0x1] ss:$9 sm:$0xff] %v1289_v25  ;;  %v1308_v25 = vperm.slane %v2520_v60, 4 }
 0x29d   : > { %1431 = vst [vmem:[#allocation1 + $0x2] ss:$9 sm:$0xff] %v1290_v57  ;;  %v1311_v57 = vperm.slane %v2520_v60, 7  ;;  %v1317_v60 = vperm.slane %v2498_v17, 5 }
 0x29e   : > { %1432 = vst [vmem:[#allocation1 + $0x3] ss:$9 sm:$0xff] %v1291_v34  ;;  %v1313_v34 = vperm.slane %v2498_v17, 1 }
 0x29f   : > { %1433 = vst [vmem:[#allocation1 + $0x4] ss:$9 sm:$0xff] %v1292_v13  ;;  %v1314_v13 = vperm.slane %v2498_v17, 2 }
 0x2a0   : > { %1434 = vst [vmem:[#allocation1 + $0x5] ss:$9 sm:$0xff] %v1293_v3  ;;  %v1315_v3 = vperm.slane %v2498_v17, 3 }
 0x2a1   : > { %1435 = vst [vmem:[#allocation1 + $0x6] ss:$9 sm:$0xff] %v1294_v4  ;;  %v1318_v4 = vperm.slane %v2498_v17, 6  ;;  %v1325_v17 = vperm.slane %v2535_v39, 5 }
 0x2a2   : > { %1436 = vst [vmem:[#allocation1 + $0x7] ss:$9 sm:$0xff] %v1295_v11  ;;  %v1320_v11 = vperm.slane %v2535_v39, 0 }
 0x2a9   : > { %v1437_v15 = vld [vmem:[#allocation1] sm:$0xff] }
 0x2aa   : > { %1438 = vst [vmem:[#allocation1] ss:$9 sm:$0xff] %v1296_v6  ;;  %1538 = vperm.xlu2 %1992, %v1437_v15   ;;  %v1327_v6 = vperm.slane %v2535_v39, 7  ;;  %v1329_v15 = vperm.slane %v2529_v48, 1  ;;  %v1333_v39 = vperm.slane %v2529_v48, 5 }
 0x2ab   : > { %1439 = vst [vmem:[#allocation1 + $0x1] ss:$9 sm:$0xff] %v1297_v37  ;;  %v1328_v37 = vperm.slane %v2529_v48, 0 }
 0x2ac   : > { %1440 = vst [vmem:[#allocation1 + $0x2] ss:$9 sm:$0xff] %v1298_v9  ;;  %v1331_v9 = vperm.slane %v2529_v48, 3 }
 0x2ad   : > { %1441 = vst [vmem:[#allocation1 + $0x3] ss:$9 sm:$0xff] %v1299_v0  ;;  %v1334_v0 = vperm.slane %v2529_v48, 6  ;;  %v1341_v48 = vperm.slane %v2500_v1, 5 }
 0x2ae   : > { %1442 = vst [vmem:[#allocation1 + $0x4] ss:$9 sm:$0xff] %v1300_v8  ;;  %v1336_v8 = vperm.slane %v2500_v1, 0 }
 0x2af   : > { %1443 = vst [vmem:[#allocation1 + $0x5] ss:$9 sm:$0xff] %v1301_v38  ;;  %v1337_v38 = vperm.slane %v2500_v1, 1 }
 0x2b0   : > { %1444 = vst [vmem:[#allocation1 + $0x6] ss:$9 sm:$0xff] %v1302_v50 }
 0x2b1   : > { %1445 = vst [vmem:[#allocation1 + $0x7] ss:$9 sm:$0xff] %v1303_v47  ;;  %v1339_v47 = vperm.slane %v2500_v1, 3 }
 0x2b8   : > { %v1446_v35 = vld [vmem:[#allocation1] sm:$0xff] }
 0x2b9   : > { %1447 = vst [vmem:[#allocation1] ss:$9 sm:$0xff] %v1304_v30  ;;  %1541 = vperm.xlu0 %1993, %v1446_v35   ;;  %v1342_v30 = vperm.slane %v2500_v1, 6  ;;  %v1344_v35 = vperm.slane %v2546_v10, 0 }
 0x2ba   : > { %1448 = vst [vmem:[#allocation1 + $0x1] ss:$9 sm:$0xff] %v1305_v33  ;;  %v1343_v33 = vperm.slane %v2500_v1, 7  ;;  %v1349_v1 = vperm.slane %v2546_v10, 5 }
 0x2bb   : > { %1449 = vst [vmem:[#allocation1 + $0x2] ss:$9 sm:$0xff] %v1306_v19  ;;  %v1345_v19 = vperm.slane %v2546_v10, 1 }
 0x2bc   : > { %1450 = vst [vmem:[#allocation1 + $0x3] ss:$9 sm:$0xff] %v1307_v51 }
 0x2bd   : > { %1451 = vst [vmem:[#allocation1 + $0x4] ss:$9 sm:$0xff] %v1308_v25  ;;  %v1346_v25 = vperm.slane %v2546_v10, 2 }
 0x2be   : > { %1452 = vst [vmem:[#allocation1 + $0x5] ss:$9 sm:$0xff] %v1309_v23  ;;  %v1347_v23 = vperm.slane %v2546_v10, 3 }
 0x2bf   : > { %1453 = vst [vmem:[#allocation1 + $0x6] ss:$9 sm:$0xff] %v1310_v52  ;;  %v1348_v52 = vperm.slane %v2546_v10, 4 }
 0x2c0   : > { %1454 = vst [vmem:[#allocation1 + $0x7] ss:$9 sm:$0xff] %v1311_v57  ;;  %v1350_v57 = vperm.slane %v2546_v10, 6 }
 0x2c7   : > { %v1455_v61 = vld [vmem:[#allocation1] sm:$0xff] }
 0x2c8   : > { %1456 = vst [vmem:[#allocation1] ss:$9 sm:$0xff] %v1312_v31  ;;  %1544 = vperm.xlu1 %1994, %v1455_v61   ;;  %v1351_v31 = vperm.slane %v2546_v10, 7  ;;  %v1353_v61 = vperm.slane %v2533_v53, 1  ;;  %v1357_v10 = vperm.slane %v2533_v53, 5 }
 0x2c9   : > { %1457 = vst [vmem:[#allocation1 + $0x1] ss:$9 sm:$0xff] %v1313_v34  ;;  %v1352_v34 = vperm.slane %v2533_v53, 0 }
 0x2ca   : > { %1458 = vst [vmem:[#allocation1 + $0x2] ss:$9 sm:$0xff] %v1314_v13 }
 0x2cb   : > { %1459 = vst [vmem:[#allocation1 + $0x3] ss:$9 sm:$0xff] %v1315_v3  ;;  %v1354_v3 = vperm.slane %v2533_v53, 2 }
 0x2cc   : > { %1460 = vst [vmem:[#allocation1 + $0x4] ss:$9 sm:$0xff] %v1316_v44  ;;  %v1355_v44 = vperm.slane %v2533_v53, 3 }
 0x2cd   : > { %1461 = vst [vmem:[#allocation1 + $0x5] ss:$9 sm:$0xff] %v1317_v60  ;;  %v1356_v60 = vperm.slane %v2533_v53, 4 }
 0x2ce   : > { %1462 = vst [vmem:[#allocation1 + $0x6] ss:$9 sm:$0xff] %v1318_v4  ;;  %v1358_v4 = vperm.slane %v2533_v53, 6 }
 0x2cf   : > { %1463 = vst [vmem:[#allocation1 + $0x7] ss:$9 sm:$0xff] %v1319_v46  ;;  %v1359_v46 = vperm.slane %v2533_v53, 7  ;;  %v1364_v53 = vperm.slane %v2504_v40, 4 }
 0x2d6   : > { %v1464_v26 = vld [vmem:[#allocation1] sm:$0xff] }
 0x2d7   : > { %1465 = vst [vmem:[#allocation1] ss:$9 sm:$0xff] %v1320_v11  ;;  %1547 = vperm.xlu2 %1992, %v1464_v26   ;;  %v1360_v11 = vperm.slane %v2504_v40, 0  ;;  %v1361_v26 = vperm.slane %v2504_v40, 1 }
 0x2d8   : > { %1466 = vst [vmem:[#allocation1 + $0x1] ss:$9 sm:$0xff] %v1321_v28 }
 0x2d9   : > { %1467 = vst [vmem:[#allocation1 + $0x2] ss:$9 sm:$0xff] %v1322_v63  ;;  %v1362_v63 = vperm.slane %v2504_v40, 2 }
 0x2da   : > { %1468 = vst [vmem:[#allocation1 + $0x3] ss:$9 sm:$0xff] %v1323_v59  ;;  %v1363_v59 = vperm.slane %v2504_v40, 3 }
 0x2db   : > { %1469 = vst [vmem:[#allocation1 + $0x4] ss:$9 sm:$0xff] %v1324_v14  ;;  %v1365_v14 = vperm.slane %v2504_v40, 5 }
 0x2dc   : > { %1470 = vst [vmem:[#allocation1 + $0x5] ss:$9 sm:$0xff] %v1325_v17  ;;  %v1367_v17 = vperm.slane %v2504_v40, 7 }
 0x2dd   : > { %1471 = vst [vmem:[#allocation1 + $0x6] ss:$9 sm:$0xff] %v1326_v32 }
 0x2de   : > { %1472 = vst [vmem:[#allocation1 + $0x7] ss:$9 sm:$0xff] %v1327_v6  ;;  %v2112_v6 = vmov 0.0  }
 0x2df   : > { %323 = vst [vmem:[#allocation2] sm:$0x1] %v2112_v6 }
 0x2e0   : > { %324 = vst [vmem:[#allocation3] sm:$0x1] %v2112_v6 }
 0x2e5   : > { %v1473_v16 = vld [vmem:[#allocation1] sm:$0xff] }
 0x2e6   : > { %1550 = vperm.xlu0 %1993, %v1473_v16   ;;  %1474 = vst [vmem:[#allocation1] ss:$9 sm:$0xff] %v1328_v37  ;;  %v1521_v16 = vpop.permute.xlu0 %1520 }
 0x2e7   : > { %1475 = vst [vmem:[#allocation1 + $0x1] ss:$9 sm:$0xff] %v1329_v15  ;;  %v1527_v15 = vpop.permute.xlu2 %1526 }
 0x2e8   : > { %1476 = vst [vmem:[#allocation1 + $0x2] ss:$9 sm:$0xff] %v1330_v2 }
 0x2e9   : > { %1477 = vst [vmem:[#allocation1 + $0x3] ss:$9 sm:$0xff] %v1331_v9 }
 0x2ea   : > { %1478 = vst [vmem:[#allocation1 + $0x4] ss:$9 sm:$0xff] %v1332_v12 }
 0x2eb   : > { %1479 = vst [vmem:[#allocation1 + $0x5] ss:$9 sm:$0xff] %v1333_v39  ;;  %v1567_v39 = vperm.slane %v1521_v16, %v2509_v62 }
 0x2ec   : > { %1480 = vst [vmem:[#allocation1 + $0x6] ss:$9 sm:$0xff] %v1334_v0  ;;  %v1570_v0 = vperm.slane %v1527_v15, %v2556_v22 }
 0x2ed   : > { %1481 = vst [vmem:[#allocation1 + $0x7] ss:$9 sm:$0xff] %v1335_v7 }
 0x2ef   : > { %v1533_v2 = vpop.permute.xlu2 %1532 }
 0x2f4   : > { %v1482_v50 = vld [vmem:[#allocation1] sm:$0xff] }
 0x2f5   : > { %1553 = vperm.xlu1 %1994, %v1482_v50   ;;  %1483 = vst [vmem:[#allocation1] ss:$9 sm:$0xff] %v1336_v8 }
 0x2f6   : > { %1484 = vst [vmem:[#allocation1 + $0x1] ss:$9 sm:$0xff] %v1337_v38 }
 0x2f7   : > { %1485 = vst [vmem:[#allocation1 + $0x2] ss:$9 sm:$0xff] %v1338_v54  ;;  %v1574_v54 = vperm.slane %v1533_v2, %v2578_v42  ;;  %v1204_v42 = vadd.s32 4294967200, %v2509_v62 }
 0x2f8   : > { %1486 = vst [vmem:[#allocation1 + $0x3] ss:$9 sm:$0xff] %v1339_v47 }
 0x2f9   : > { %1487 = vst [vmem:[#allocation1 + $0x4] ss:$9 sm:$0xff] %v1340_v24 }
 0x2fa   : > { %1488 = vst [vmem:[#allocation1 + $0x5] ss:$9 sm:$0xff] %v1341_v48 }
 0x2fb   : > { %1489 = vst [vmem:[#allocation1 + $0x6] ss:$9 sm:$0xff] %v1342_v30 }
 0x2fc   : > { %1490 = vst [vmem:[#allocation1 + $0x7] ss:$9 sm:$0xff] %v1343_v33  ;;  %v1196_v33 = vadd.s32 4294967216, %v2509_v62 }
 0x303   : > { %v1491_v51 = vld [vmem:[#allocation1] sm:$0xff] }
 0x304   : > { %1556 = vperm.xlu1 %1994, %v1491_v51   ;;  %1492 = vst [vmem:[#allocation1] ss:$9 sm:$0xff] %v1344_v35  ;;  %v1200_v35 = vadd.s32 4294967208, %v2509_v62 }
 0x305   : > { %1493 = vst [vmem:[#allocation1 + $0x1] ss:$9 sm:$0xff] %v1345_v19 }
 0x306   : > { %1494 = vst [vmem:[#allocation1 + $0x2] ss:$9 sm:$0xff] %v1346_v25  ;;  %v1208_v25 = vadd.s32 4294967192, %v2509_v62 }
 0x307   : > { %1495 = vst [vmem:[#allocation1 + $0x3] ss:$9 sm:$0xff] %v1347_v23 }
 0x308   : > { %1496 = vst [vmem:[#allocation1 + $0x4] ss:$9 sm:$0xff] %v1348_v52 }
 0x309   : > { %1497 = vst [vmem:[#allocation1 + $0x5] ss:$9 sm:$0xff] %v1349_v1 }
 0x30a   : > { %1498 = vst [vmem:[#allocation1 + $0x6] ss:$9 sm:$0xff] %v1350_v57 }
 0x30b   : > { %1499 = vst [vmem:[#allocation1 + $0x7] ss:$9 sm:$0xff] %v1351_v31 }
 0x312   : > { %v1500_v13 = vld [vmem:[#allocation1] sm:$0xff] }
 0x313   : > { %1559 = vperm.xlu0 %1993, %v1500_v13   ;;  %1501 = vst [vmem:[#allocation1] ss:$9 sm:$0xff] %v1352_v34  ;;  %v1212_v13 = vadd.s32 4294967184, %v2509_v62 }
 0x314   : > { %1502 = vst [vmem:[#allocation1 + $0x1] ss:$9 sm:$0xff] %v1353_v61 }
 0x315   : > { %1503 = vst [vmem:[#allocation1 + $0x2] ss:$9 sm:$0xff] %v1354_v3 }
 0x316   : > { %1504 = vst [vmem:[#allocation1 + $0x3] ss:$9 sm:$0xff] %v1355_v44  ;;  %v1216_v44 = vadd.s32 4294967176, %v2509_v62 }
 0x317   : > { %1505 = vst [vmem:[#allocation1 + $0x4] ss:$9 sm:$0xff] %v1356_v60 }
 0x318   : > { %1506 = vst [vmem:[#allocation1 + $0x5] ss:$9 sm:$0xff] %v1357_v10 }
 0x319   : > { %1507 = vst [vmem:[#allocation1 + $0x6] ss:$9 sm:$0xff] %v1358_v4 }
 0x31a   : > { %1508 = vst [vmem:[#allocation1 + $0x7] ss:$9 sm:$0xff] %v1359_v46  ;;  %v1223_v46 = vld [vmem:[#allocation3] sm:$0x1] }
 0x31b   : > { %1146 = vperm.xlu0 %1993, %v2496_v21   ;;  %v1366_v21 = vperm.slane %v2504_v40, 6 }
 0x321   : > { %v1509_v28 = vld [vmem:[#allocation1] sm:$0xff] }
 0x322   : > { %1562 = vperm.xlu2 %1992, %v1509_v28   ;;  %1510 = vst [vmem:[#allocation1] ss:$9 sm:$0xff] %v1360_v11 }
 0x323   : > { %1511 = vst [vmem:[#allocation1 + $0x1] ss:$9 sm:$0xff] %v1361_v26  ;;  %1155 = vperm.xlu0 %1993, %v2515_v43   ;;  %v1524_v43 = vpop.permute.xlu1 %1523 }
 0x324   : > { %1512 = vst [vmem:[#allocation1 + $0x2] ss:$9 sm:$0xff] %v1362_v63 }
 0x325   : > { %1513 = vst [vmem:[#allocation1 + $0x3] ss:$9 sm:$0xff] %v1363_v59 }
 0x326   : > { %1514 = vst [vmem:[#allocation1 + $0x4] ss:$9 sm:$0xff] %v1364_v53 }
 0x327   : > { %1515 = vst [vmem:[#allocation1 + $0x5] ss:$9 sm:$0xff] %v1365_v14 }
 0x328   : > { %1516 = vst [vmem:[#allocation1 + $0x6] ss:$9 sm:$0xff] %v1366_v21 }
 0x329   : > { %1517 = vst [vmem:[#allocation1 + $0x7] ss:$9 sm:$0xff] %v1367_v17 }
 0x32a   : > { %1143 = vperm.xlu2 %1992, %v2490_v58   ;;  %v1568_v58 = vperm.slane %v1524_v43, %v2559_v27 }
 0x32b   : > { %v1530_v37 = vpop.permute.xlu1 %1529  ;;  %v1542_v12 = vpop.permute.xlu0 %1541 }
 0x330   : > { %v1518_v32 = vld [vmem:[#allocation1] sm:$0xff] }
 0x331   : > { %1565 = vperm.xlu1 %1994, %v1518_v32  }
 0x332   : > { %1152 = vperm.xlu2 %1992, %v2506_v56   ;;  %v1569_v56 = vsel %vm1162_vm1, %v1568_v58, %v1567_v39  ;;  %v813_v39 = vld [vmem:[#allocation2] sm:$0x1] }
 0x333   : > { %v1536_v40 = vpop.permute.xlu1 %1535  ;;  %v1571_v8 = vsel %vm1166_vm2, %v1570_v0, %v1569_v56 }
 0x334   : > { %v1576_v50 = vperm.slane %v1536_v40, %v2574_v36 }
 0x339   : > { %1140 = vperm.xlu1 %1994, %v2488_v5   ;;  %v1572_v5 = vperm.slane %v1530_v37, %v2538_v45  ;;  %v1580_v45 = vperm.slane %v1542_v12, %v2550_v18 }
 0x33b   : > { %v1545_v9 = vpop.permute.xlu1 %1544  ;;  %v1573_v38 = vsel %vm1170_vm3, %v1572_v5, %v1571_v8 }
 0x33c   : > { %v1575_v47 = vsel %vm1174_vm4, %v1574_v54, %v1573_v38  ;;  %v1582_v22 = vperm.slane %v1545_v9, %v2588_v49 }
 0x33d   : > { %v1577_v24 = vsel %vm1178_vm5, %v1576_v50, %v1575_v47 }
 0x341   : > { %1149 = vperm.xlu1 %1994, %v2502_v41   ;;  %v1539_v41 = vpop.permute.xlu2 %1538 }
 0x342   : > { %v1578_v30 = vperm.slane %v1539_v41, %v2591_v55 }
 0x344   : > { %v1579_v36 = vsel %vm1182_vm6, %v1578_v30, %v1577_v24 }
 0x345   : > { %v1581_v19 = vsel %vm1186_vm7, %v1580_v45, %v1579_v36 }
 0x346   : > { %v1583_v23 = vsel %vm1190_vm8, %v1582_v22, %v1581_v19 }
 0x349   : > { %v1548_v48 = vpop.permute.xlu2 %1547 }
 0x34a   : > { %v1584_v55 = vperm.slane %v1548_v48, %v2605_v20 }
 0x34c   : > { %v1585_v57 = vsel %vm1194_vm9, %v1584_v55, %v1583_v23 }
 0x358   : > { %v1551_v27 = vpop.permute.xlu0 %1550 }
 0x359   : > { %v1586_v18 = vperm.slane %v1551_v27, %v1196_v33 }
 0x35b   : > { %v1587_v61 = vsel %vm1198_vm10, %v1586_v18, %v1585_v57 }
 0x367   : > { %v1554_v7 = vpop.permute.xlu1 %1553 }
 0x368   : > { %v1588_v49 = vperm.slane %v1554_v7, %v1200_v35 }
 0x36a   : > { %v1589_v3 = vsel %vm1202_vm11, %v1588_v49, %v1587_v61 }
 0x376   : > { %v1557_v51 = vpop.permute.xlu1 %1556 }
 0x377   : > { %v1590_v1 = vperm.slane %v1557_v51, %v1204_v42 }
 0x379   : > { %v1591_v20 = vsel %vm1206_vm12, %v1590_v1, %v1589_v3 }
 0x37c   : > { %v1563_v31 = vpop.permute.xlu2 %1562 }
 0x37d   : > { %v1594_v10 = vperm.slane %v1563_v31, %v1212_v13 }
 0x384   : > { %v1144_v59 = vpop.permute.xlu2 %1143 }
 0x385   : > { %v1560_v52 = vpop.permute.xlu0 %1559  ;;  %v1201_v21 = vperm.slane %v1144_v59, %v1200_v35 }
 0x386   : > { %v1592_v34 = vperm.slane %v1560_v52, %v1208_v25 }
 0x388   : > { %v1593_v60 = vsel %vm1210_vm13, %v1592_v34, %v1591_v20 }
 0x389   : > { %v1595_v26 = vsel %vm1214_vm14, %v1594_v10, %v1593_v60 }
 0x38c   : > { %v1153_v40 = vpop.permute.xlu2 %1152 }
 0x38d   : > { %v1147_v53 = vpop.permute.xlu0 %1146  ;;  %v1213_v58 = vperm.slane %v1153_v40, %v1212_v13 }
 0x38e   : > { %v1205_v17 = vperm.slane %v1147_v53, %v1204_v42 }
 0x395   : > { %v1156_v16 = vpop.permute.xlu0 %1155 }
 0x396   : > { %v1217_v12 = vperm.slane %v1156_v16, %v1216_v44 }
 0x3a3   : > { %v1566_v4 = vpop.permute.xlu1 %1565 }
 0x3a4   : > { %v1596_v11 = vperm.slane %v1566_v4, %v1216_v44 }
 0x3a6   : > { %v1597_v28 = vsel %vm1218_vm15, %v1596_v11, %v1595_v26 }
 0x3a7   : > { %v1599_v63 = vadd.f32 %v1597_v28, %v1223_v46 }
 0x3a9   : > { %1600 = vst [vmem:[#allocation3] sm:$0x1] %v1599_v63 }
 0x3ab   : > { %v1141_v14 = vpop.permute.xlu1 %1140 }
 0x3ac   : > { %v1197_v62 = vperm.slane %v1141_v14, %v1196_v33 }
 0x3ae   : > { %v1199_v32 = vsel %vm1198_vm10, %v1197_v62, %v2611_v29 }
 0x3af   : > { %v1203_v43 = vsel %vm1202_vm11, %v1201_v21, %v1199_v32 }
 0x3b0   : > { %v1207_v6 = vsel %vm1206_vm12, %v1205_v17, %v1203_v43  ;;  %v1605_v37 = vld [vmem:[#allocation3] sm:$0x1] }
 0x3b1   : > { %v1606_v15 = vmax.f32 %v1605_v37, 1e-30 }
 0x3b3   : > { %v1150_v2 = vpop.permute.xlu1 %1149  ;;  %2029 = vlog2.f32 %v1606_v15 }
 0x3b4   : > { %v1209_v9 = vperm.slane %v1150_v2, %v1208_v25 }
 0x3b6   : > { %v1211_v56 = vsel %vm1210_vm13, %v1209_v9, %v1207_v6 }
 0x3b7   : > { %v1215_v5 = vsel %vm1214_vm14, %v1213_v58, %v1211_v56 }
 0x3b8   : > { %v1219_v29 = vsel %vm1218_vm15, %v1217_v12, %v1215_v5 }
 0x3b9   : > { %v2030_v41 = vpop.eup %2029  ;;  %v1221_v0 = vadd.f32 %v1219_v29, %v813_v39 }
 0x3ba   : > { %v1619_v7 = vmul.f32 0.6931472, %v2030_v41 }
 0x3bb   : > { %1222 = vst [vmem:[#allocation2] sm:$0x1] %v1221_v0 }
 0x3bc   : > { %v1620_v8 = vsel %vm1607_vm0, %v1619_v7, 0.0 }
 0x3bd   : > { %1621 = vadd.xlane.f32.xlu2 %v1620_v8 }
 0x3c2   : > { %v1604_v38 = vld [vmem:[#allocation2] sm:$0x1] }
 0x3c3   : > { %v1608_v50 = vsel %vm1607_vm0, %v1604_v38, 0.0 }
 0x3c4   : > { %1609 = vadd.xlane.f32.xlu1 %v1608_v50 }
 0x430   : > { %v1622_v54 = vpop.xlane.xlu2 %1621 }
 0x431   : > { %v1623_v27 = vrot.slane %v1622_v54, 4 }
 0x433   : > { %v1624_v47 = vadd.f32 %v1623_v27, %v1622_v54 }
 0x435   : > { %v1625_v24 = vrot.slane %v1624_v47, 2 }
 0x437   : > { %v1610_v48 = vpop.xlane.xlu1 %1609  ;;  %v1626_v22 = vadd.f32 %v1625_v24, %v1624_v47 }
 0x438   : > { %v1611_v45 = vrot.slane %v1610_v48, 4 }
 0x439   : > { %v1627_v36 = vrot.slane %v1626_v22, 1 }
 0x43a   : > { %v1612_v30 = vadd.f32 %v1611_v45, %v1610_v48 }
 0x43b   : > { %v1628_v51 = vadd.f32 %v1627_v36, %v1626_v22 }
 0x43c   : > { %v1613_v33 = vrot.slane %v1612_v30, 2 }
 0x43e   : > { %v1614_v35 = vadd.f32 %v1613_v33, %v1612_v30 }
 0x440   : > { %v1615_v42 = vrot.slane %v1614_v35, 1 }
 0x442   : > { %v1616_v19 = vadd.f32 %v1615_v42, %v1614_v35 }
 0x444   : > { %1915 = vpush %v1616_v19 }
 0x445   : > { %1917 = vpush %v1628_v51 }
 0x475   : > { %s1916_s9 = spop %1915 }
 0x476   : > { %s1918_s10 = spop %1917 }
 0x477   : > { %s1630_s13 = smul.f32 128.0, %s1918_s10 }
 0x479   : > { %s1631_s21 = ssub.f32 %s1630_s13, %s1916_s9 }
 0x47b   : > { %v1633_v25 = vstv %s1631_s21 }
 0x47c   : > { %1634 = vst [vmem:[%s286_s11] sm:$0xff] %v1633_v25 }
 0x47d   : > { %2058 = shalt.err (!%p2055_p5)
}
 0x47e   : > { %1919 = dma.vmem_to_hbm [thread:$0]  (%p2178_p4), %s1650_s12, 128, %s1652_s14, %s1636_s22  }
 0x47f PF: > { %p1925_p6 = scmp.ge.s32.totalorder %s2109_s20, 2  ;;  %s1663_s29 = sand.u32 1, %s2089_s15  }
 0x480   : > { %s1664_s8 = scalar_lea.sflag [#allocation5], %s1663_s29 }
 0x481   : > { %p1922_p7 = pnand %p1925_p6, %p2185_p8 }
 0x483   : > { %p1923_p9 = pneg %p1922_p7 }
 0x485   : > { %2084 = dma.done.wait (%p1923_p9), %s1664_s8, 128  }
 0x486   : > { %2086 = vsyncadd (%p1923_p9), %s1664_s8, 4294967168  ;;  %s17_s20 = sadd.s32 1, %s2109_s20   ;;  %s2765_s15 = smov %s2093_s16 }
 0x487   : > { %p14_p10 = scmp.ge.s32.totalorder %s17_s20, 4   ;;  %s2766_s16 = smov %s2097_s17 }
 0x488   : > { %s2767_s17 = smov %s2191_s28  ;;  %s2768_s18 = smov %s2105_s19 }
 0x489   : > { %s2769_s19 = smov %s2771_s23  ;;  %16 = sbr.rel (!%p14_p10) target bundleno = 4 (0x4), region = 102 }
 0x48e   :  { %1670 = vsyncpa [#allocation5], 1 }
 0x48f   :  { %1672 = vsyncpa [#allocation5 + $0x1], 1 }

</bundles_post_ra>
